<compile_context>
chip_gen: v7x
topology: tpu7x:2x2x1
jax: 0.10.0
libtpu: 0.0.40
codegen_flags: <defaults>
</compile_context>

<pallas_src>
import functools

import jax
import jax.numpy as jnp
from jax.experimental import pallas as pl
from jax.experimental.pallas import tpu as pltpu

N_EMBD = 384
HIDDEN = 4 * N_EMBD
DROPOUT = 0.2  # unused in eval mode


def _round_up(x, m):
    return ((x + m - 1) // m) * m


def _ffwd_kernel(x_ref, w1_ref, b1_ref, w2_ref, b2_ref, o_ref):
    """One row tile of: y = relu(x @ W1 + b1) @ W2 + b2 (dropout = identity)."""
    x = x_ref[...]                                            # (bm, C) bf16
    # First linear: bf16 operands, f32 accumulate on the MXU; bias + ReLU in f32.
    h = jnp.dot(x, w1_ref[...], preferred_element_type=jnp.float32)
    h = jnp.maximum(h + b1_ref[...], 0.0)
    # Second linear: round the activation back to bf16 so the MXU stays bf16-native.
    y = jnp.dot(h.astype(jnp.bfloat16), w2_ref[...],
                preferred_element_type=jnp.float32)
    y = y + b2_ref[...]
    # TODO(synk): training-mode dropout (p=0.2) would use pltpu.prng_seed +
    # pltpu.prng_random_bits; PyTorch's RNG stream cannot be matched bit-exactly,
    # so eval-mode (identity) semantics are used here.
    o_ref[...] = y.astype(o_ref.dtype)


@functools.partial(jax.jit, static_argnames=("block_m",))
def feed_forward(x, w1, b1, w2, b2, *, block_m=512):
    """x: (B, T, C) -> (B, T, C), C = N_EMBD."""
    B, T, C = x.shape
    H = w1.shape[1]
    M = B * T

    # Row-tile size: large enough to keep the MXU fully fed; clamp for tiny inputs
    # so the demo shapes don't pad 32x. Must stay a multiple of 8 (sublane rule).
    bm = min(block_m, _round_up(M, 8))
    m_pad = _round_up(M, bm)
    grid_m = m_pad // bm

    x2d = x.reshape(M, C)
    if m_pad != M:
        x2d = jnp.pad(x2d, ((0, m_pad - M), (0, 0)))

    # bf16 operands (accumulation stays f32 inside the kernel).
    x_bf = x2d.astype(jnp.bfloat16)
    w1_bf = w1.astype(jnp.bfloat16)
    w2_bf = w2.astype(jnp.bfloat16)
    b1_2d = b1.reshape(1, H).astype(jnp.float32)
    b2_2d = b2.reshape(1, C).astype(jnp.float32)

    cost = pl.CostEstimate(
        flops=4 * m_pad * C * H,                    # two matmuls, 2*M*C*H each
        transcendentals=0,
        bytes_accessed=(2 * m_pad * C               # x (bf16)
                        + 2 * C * H + 2 * H * C     # W1, W2 (bf16)
                        + 4 * H + 4 * C             # biases (f32)
                        + 4 * m_pad * C),           # output (f32)
    )

    out2d = pl.pallas_call(
        _ffwd_kernel,
        out_shape=jax.ShapeDtypeStruct((m_pad, C), x.dtype),
        grid_spec=pltpu.PrefetchScalarGridSpec(
            num_scalar_prefetch=0,
            grid=(grid_m,),
            in_specs=[
                pl.BlockSpec((bm, C), lambda i: (i, 0)),   # x row tile
                pl.BlockSpec((C, H), lambda i: (0, 0)),    # W1 (resident, fetched once)
                pl.BlockSpec((1, H), lambda i: (0, 0)),    # b1
                pl.BlockSpec((H, C), lambda i: (0, 0)),    # W2 (resident, fetched once)
                pl.BlockSpec((1, C), lambda i: (0, 0)),    # b2
            ],
            out_specs=pl.BlockSpec((bm, C), lambda i: (i, 0)),
        ),
        compiler_params=pltpu.CompilerParams(
            dimension_semantics=("parallel",),      # rows are independent (megacore)
            vmem_limit_bytes=32 * 1024 * 1024,      # headroom; actual use ~11 MiB @ bm=512
        ),
        cost_estimate=cost,
    )(x_bf, w1_bf, b1_2d, w2_bf, b2_2d)

    return out2d[:M].reshape(B, T, C)


def _init_params(key, n_embd=N_EMBD, hidden=HIDDEN):
    """Deterministic init mimicking PyTorch Linear default (U(-k, k), k=1/sqrt(fan_in))."""
    k1, k2, k3, k4 = jax.random.split(key, 4)
    lim1 = 1.0 / jnp.sqrt(jnp.float32(n_embd))
    lim2 = 1.0 / jnp.sqrt(jnp.float32(hidden))
    w1 = jax.random.uniform(k1, (n_embd, hidden), jnp.float32, -lim1, lim1)
    b1 = jax.random.uniform(k2, (hidden,), jnp.float32, -lim1, lim1)
    w2 = jax.random.uniform(k3, (hidden, n_embd), jnp.float32, -lim2, lim2)
    b2 = jax.random.uniform(k4, (n_embd,), jnp.float32, -lim2, lim2)
    return w1, b1, w2, b2


def _reference(x, w1, b1, w2, b2):
    B, T, C = x.shape
    r = jnp.maximum(x.reshape(-1, C) @ w1 + b1, 0.0) @ w2 + b2
    return r.reshape(B, T, C)


if __name__ == "__main__":
    key = jax.random.PRNGKey(0)
    k_x, k_p = jax.random.split(key)
    w1, b1, w2, b2 = _init_params(k_p)

    # Small demo shape (block_m auto-clamps to the row count).
    B, T = 2, 8
    x = jax.random.normal(k_x, (B, T, N_EMBD), jnp.float32)
    y = jax.block_until_ready(feed_forward(x, w1, b1, w2, b2))
    ref = _reference(x, w1, b1, w2, b2)
    assert y.shape == (B, T, N_EMBD)
    # bf16 operands (f32 accumulate) -> loosened tolerance vs. f32 reference.
    assert jnp.allclose(y, ref, atol=5e-2, rtol=5e-2)

    # Ragged row count (exercises the padding path, no divisibility assert).
    x2 = jax.random.normal(jax.random.PRNGKey(1), (3, 100, N_EMBD), jnp.float32)
    y2 = jax.block_until_ready(feed_forward(x2, w1, b1, w2, b2))
    ref2 = _reference(x2, w1, b1, w2, b2)
    assert y2.shape == (3, 100, N_EMBD)
    assert jnp.allclose(y2, ref2, atol=5e-2, rtol=5e-2)

    print("KERNEL_OK")
</pallas_src>

<mosaic_0001>
module attributes {stable_mosaic.version = 11 : i64} {
  func.func @_ffwd_kernel(%arg0: i32, %arg1: memref<16x384xbf16, #tpu.memory_space<vmem>>, %arg2: memref<384x1536xbf16, #tpu.memory_space<vmem>>, %arg3: memref<1x1536xf32, #tpu.memory_space<vmem>>, %arg4: memref<1536x384xbf16, #tpu.memory_space<vmem>>, %arg5: memref<1x384xf32, #tpu.memory_space<vmem>>, %arg6: memref<16x384xf32, #tpu.memory_space<vmem>>) attributes {dimension_semantics = [#tpu.dimension_semantics<parallel>], iteration_bounds = array<i64: 1>, scalar_prefetch = 0 : i64, scratch_operands = 0 : i64, tpu.core_type = #tpu.core_type<tc>, window_params = [{transform_indices = @transform_0, window_bounds = array<i64: 16, 384>}, {pipeline_mode = #tpu.pipeline_mode<synchronous>, transform_indices = @transform_1, window_bounds = array<i64: 384, 1536>}, {pipeline_mode = #tpu.pipeline_mode<synchronous>, transform_indices = @transform_2, window_bounds = array<i64: 1, 1536>}, {pipeline_mode = #tpu.pipeline_mode<synchronous>, transform_indices = @transform_3, window_bounds = array<i64: 1536, 384>}, {pipeline_mode = #tpu.pipeline_mode<synchronous>, transform_indices = @transform_4, window_bounds = array<i64: 1, 384>}, {transform_indices = @transform_5, window_bounds = array<i64: 16, 384>}]} {
    %c0 = arith.constant 0 : index
    %c0_0 = arith.constant 0 : index
    %0 = vector.load %arg1[%c0, %c0_0] : memref<16x384xbf16, #tpu.memory_space<vmem>>, vector<16x384xbf16>
    %c0_1 = arith.constant 0 : index
    %c0_2 = arith.constant 0 : index
    %1 = vector.load %arg2[%c0_1, %c0_2] : memref<384x1536xbf16, #tpu.memory_space<vmem>>, vector<384x1536xbf16>
    %cst = arith.constant dense<0.000000e+00> : vector<16x1536xf32>
    %2 = tpu.matmul %0, %1, %cst {dimension_numbers = #tpu.dot_dimension_numbers<[1], [0], [0], [1], [0, 0, 1, 1], [], []>} : vector<16x384xbf16>, vector<384x1536xbf16>, vector<16x1536xf32> -> vector<16x1536xf32>
    %c0_3 = arith.constant 0 : index
    %c0_4 = arith.constant 0 : index
    %3 = vector.load %arg3[%c0_3, %c0_4] : memref<1x1536xf32, #tpu.memory_space<vmem>>, vector<1x1536xf32>
    %4 = vector.broadcast %3 : vector<1x1536xf32> to vector<16x1536xf32>
    %5 = arith.addf %2, %4 : vector<16x1536xf32>
    %cst_5 = arith.constant 0.000000e+00 : f32
    %6 = vector.broadcast %cst_5 : f32 to vector<16x1536xf32>
    %7 = arith.maximumf %5, %6 : vector<16x1536xf32>
    %8 = arith.truncf %7 : vector<16x1536xf32> to vector<16x1536xbf16>
    %c0_6 = arith.constant 0 : index
    %c0_7 = arith.constant 0 : index
    %9 = vector.load %arg4[%c0_6, %c0_7] : memref<1536x384xbf16, #tpu.memory_space<vmem>>, vector<1536x384xbf16>
    %cst_8 = arith.constant dense<0.000000e+00> : vector<16x384xf32>
    %10 = tpu.matmul %8, %9, %cst_8 {dimension_numbers = #tpu.dot_dimension_numbers<[1], [0], [0], [1], [0, 0, 1, 1], [], []>} : vector<16x1536xbf16>, vector<1536x384xbf16>, vector<16x384xf32> -> vector<16x384xf32>
    %c0_9 = arith.constant 0 : index
    %c0_10 = arith.constant 0 : index
    %11 = vector.load %arg5[%c0_9, %c0_10] : memref<1x384xf32, #tpu.memory_space<vmem>>, vector<1x384xf32>
    %12 = vector.broadcast %11 : vector<1x384xf32> to vector<16x384xf32>
    %13 = arith.addf %10, %12 : vector<16x384xf32>
    %c0_11 = arith.constant 0 : index
    %c0_12 = arith.constant 0 : index
    %14 = vector.load %arg6[%c0_11, %c0_12] : memref<16x384xf32, #tpu.memory_space<vmem>>, vector<16x384xf32>
    tpu.vector_store %arg6[%c0_11, %c0_12], %13 {strides = array<i32>} : memref<16x384xf32, #tpu.memory_space<vmem>>, vector<16x384xf32>,
    return
  }
  func.func @transform_0(%arg0: i32) -> (i32, i32) {
    %c0_i32 = arith.constant 0 : i32
    %c0_i32_0 = arith.constant 0 : i32
    return %arg0, %c0_i32 : i32, i32
  }
  func.func @transform_1(%arg0: i32) -> (i32, i32) {
    %c0_i32 = arith.constant 0 : i32
    %c0_i32_0 = arith.constant 0 : i32
    %c0_i32_1 = arith.constant 0 : i32
    return %c0_i32, %c0_i32_0 : i32, i32
  }
  func.func @transform_2(%arg0: i32) -> (i32, i32) {
    %c0_i32 = arith.constant 0 : i32
    %c0_i32_0 = arith.constant 0 : i32
    %c0_i32_1 = arith.constant 0 : i32
    return %c0_i32, %c0_i32_0 : i32, i32
  }
  func.func @transform_3(%arg0: i32) -> (i32, i32) {
    %c0_i32 = arith.constant 0 : i32
    %c0_i32_0 = arith.constant 0 : i32
    %c0_i32_1 = arith.constant 0 : i32
    return %c0_i32, %c0_i32_0 : i32, i32
  }
  func.func @transform_4(%arg0: i32) -> (i32, i32) {
    %c0_i32 = arith.constant 0 : i32
    %c0_i32_0 = arith.constant 0 : i32
    %c0_i32_1 = arith.constant 0 : i32
    return %c0_i32, %c0_i32_0 : i32, i32
  }
  func.func @transform_5(%arg0: i32) -> (i32, i32) {
    %c0_i32 = arith.constant 0 : i32
    %c0_i32_0 = arith.constant 0 : i32
    return %arg0, %c0_i32 : i32, i32
  }
}

</mosaic_0001>

<bundles_post_ra>
// kernel: feed_forward.1
= control target key start
LH: loop header
LB: loop body
LE: loop exit
PB: predicated region body
PF: predicated region fallthrough
CT: control target
= control target key end

     0   :  { %v6484_v63 = vmov 0   ;;  %s8403_s0 = inlined_call_operand.vmem [shape: bf16[16,384], index: 0, kind: input, shape index: {}]   ;;  %s8404_s1 = inlined_call_operand.vmem [shape: bf16[384,1536], index: 1, kind: input, shape index: {}]   ;;  %s8405_s2 = inlined_call_operand.vmem [shape: f32[1,1536], index: 2, kind: input, shape index: {}]   ;;  %s8406_s3 = inlined_call_operand.vmem [shape: bf16[1536,384], index: 3, kind: input, shape index: {}]   ;;  %s8407_s4 = inlined_call_operand.vmem [shape: f32[1,384], index: 4, kind: input, shape index: {}]   ;;  %s8408_s5 = inlined_call_operand.hbm [shape: f32[16,384], index: 5, kind: output, shape index: {}]  }
   0x1   :  { %v5636_v0 = vld [vmem:[%s8404_s1 + $0x4] ss:$48 sps:$4 sm:$0xff]   ;;  %v5638_v1 = vld [vmem:[%s8404_s1] ss:$48 sps:$4 sm:$0xff]  }
   0x2   :  { %1834 = vmatprep.subr.bf16.mxu1 %v5636_v0  ;;  %v5639_v2 = vld [vmem:[%s8404_s1 + $0x64] ss:$48 sps:$4 sm:$0xff]   ;;  %v5641_v3 = vld [vmem:[%s8404_s1 + $0x60] ss:$48 sps:$4 sm:$0xff]  }
   0x3   :  { %1835 = vmatpush1.bf16.msra.mxu1 %v5638_v1  ;;  %v5642_v4 = vld [vmem:[%s8404_s1 + $0xc4] ss:$48 sps:$4 sm:$0xff]   ;;  %v5644_v5 = vld [vmem:[%s8404_s1 + $0xc0] ss:$48 sps:$4 sm:$0xff]  }
   0x4   :  { %1836 = vmatprep.subr.bf16.mxu1 %v5639_v2  ;;  %v5645_v6 = vld [vmem:[%s8404_s1 + $0x124] ss:$48 sps:$4 sm:$0xff]   ;;  %v5647_v7 = vld [vmem:[%s8404_s1 + $0x120] ss:$48 sps:$4 sm:$0xff]  }
   0x5   :  { %v5648_v8 = vld [vmem:[%s8404_s1 + $0x184] ss:$48 sps:$4 sm:$0xff]   ;;  %v5650_v9 = vld [vmem:[%s8404_s1 + $0x180] ss:$48 sps:$4 sm:$0xff]  }
   0x6   :  { %v5651_v10 = vld [vmem:[%s8404_s1 + $0x1e4] ss:$48 sps:$4 sm:$0xff]   ;;  %v5653_v11 = vld [vmem:[%s8404_s1 + $0x1e0] ss:$48 sps:$4 sm:$0xff]  }
   0x7   :  { %1837 = vmatpush1.bf16.msra.mxu1 %v5641_v3  ;;  %v5654_v12 = vld [vmem:[%s8404_s1 + $0x244] ss:$48 sps:$4 sm:$0xff]   ;;  %v5656_v14 = vld [vmem:[%s8404_s1 + $0x240] ss:$48 sps:$4 sm:$0xff]  }
   0x8   :  { %1838 = vmatprep.subr.bf16.mxu1 %v5642_v4  ;;  %v5681_v13 = vld [vmem:[%s8404_s1 + $0x14] ss:$48 sps:$4 sm:$0xff]   ;;  %v5685_v16 = vld [vmem:[%s8404_s1 + $0x10] ss:$48 sps:$4 sm:$0xff]  }
   0x9   :  { %v5657_v15 = vld [vmem:[%s8404_s1 + $0x2a4] ss:$48 sps:$4 sm:$0xff]   ;;  %2006 = vmatprep.subr.bf16.mxu0 %v5681_v13  ;;  %v5659_v19 = vld [vmem:[%s8404_s1 + $0x2a0] ss:$48 sps:$4 sm:$0xff]  }
   0xa   :  { %v5687_v17 = vld [vmem:[%s8404_s1 + $0x74] ss:$48 sps:$4 sm:$0xff]   ;;  %2007 = vmatpush1.bf16.msra.mxu0 %v5685_v16  ;;  %v5694_v20 = vld [vmem:[%s8404_s1 + $0x70] ss:$48 sps:$4 sm:$0xff]  }
   0xb   :  { %1839 = vmatpush1.bf16.msra.mxu1 %v5644_v5  ;;  %v6575_v18 = vld [vmem:[%s8403_s0 + $0x4] ss:$12 sps:$4 sm:$0xff]   ;;  %2008 = vmatprep.subr.bf16.mxu0 %v5687_v17  ;;  %v6696_v57 = vld [vmem:[%s8403_s0] ss:$12 sps:$4 sm:$0xff]  }
   0xc   :  { %1840 = vmatprep.subr.bf16.mxu1 %v5645_v6  ;;  %1866 = vmatprep.mubr.bf16.mxu1 %v6575_v18  ;;  %v5696_v21 = vld [vmem:[%s8404_s1 + $0xd4] ss:$48 sps:$4 sm:$0xff]   ;;  %v5701_v23 = vld [vmem:[%s8404_s1 + $0xd0] ss:$48 sps:$4 sm:$0xff]  }
   0xd   :  { %2038 = vmatprep.mubr.bf16.mxu0 %v6575_v18  ;;  %v5660_v22 = vld [vmem:[%s8404_s1 + $0x304] ss:$48 sps:$4 sm:$0xff]   ;;  %v5662_v25 = vld [vmem:[%s8404_s1 + $0x300] ss:$48 sps:$4 sm:$0xff]  }
   0xe   :  { %2009 = vmatpush1.bf16.msra.mxu0 %v5694_v20  ;;  %v5702_v24 = vld [vmem:[%s8404_s1 + $0x134] ss:$48 sps:$4 sm:$0xff]   ;;  %v5707_v27 = vld [vmem:[%s8404_s1 + $0x130] ss:$48 sps:$4 sm:$0xff]  }
   0xf   :  { %1841 = vmatpush1.bf16.msra.mxu1 %v5647_v7  ;;  %2010 = vmatprep.subr.bf16.mxu0 %v5696_v21  ;;  %v5663_v26 = vld [vmem:[%s8404_s1 + $0x364] ss:$48 sps:$4 sm:$0xff]   ;;  %v5665_v29 = vld [vmem:[%s8404_s1 + $0x360] ss:$48 sps:$4 sm:$0xff]  }
  0x10   :  { %1842 = vmatprep.subr.bf16.mxu1 %v5648_v8  ;;  %v5708_v28 = vld [vmem:[%s8404_s1 + $0x194] ss:$48 sps:$4 sm:$0xff]   ;;  %v5713_v31 = vld [vmem:[%s8404_s1 + $0x190] ss:$48 sps:$4 sm:$0xff]  }
  0x11   :  { %v5666_v30 = vld [vmem:[%s8404_s1 + $0x3c4] ss:$48 sps:$4 sm:$0xff]   ;;  %v5668_v33 = vld [vmem:[%s8404_s1 + $0x3c0] ss:$48 sps:$4 sm:$0xff]  }
  0x12   :  { %2011 = vmatpush1.bf16.msra.mxu0 %v5701_v23  ;;  %v5714_v32 = vld [vmem:[%s8404_s1 + $0x1f4] ss:$48 sps:$4 sm:$0xff]   ;;  %v5719_v35 = vld [vmem:[%s8404_s1 + $0x1f0] ss:$48 sps:$4 sm:$0xff]  }
  0x13   :  { %1843 = vmatpush1.bf16.msra.mxu1 %v5650_v9  ;;  %2012 = vmatprep.subr.bf16.mxu0 %v5702_v24  ;;  %v5669_v34 = vld [vmem:[%s8404_s1 + $0x424] ss:$48 sps:$4 sm:$0xff]   ;;  %v5671_v37 = vld [vmem:[%s8404_s1 + $0x420] ss:$48 sps:$4 sm:$0xff]  }
  0x14   :  { %1844 = vmatprep.subr.bf16.mxu1 %v5651_v10  ;;  %v5720_v36 = vld [vmem:[%s8404_s1 + $0x254] ss:$48 sps:$4 sm:$0xff]   ;;  %v5725_v39 = vld [vmem:[%s8404_s1 + $0x250] ss:$48 sps:$4 sm:$0xff]  }
  0x15   :  { %v5672_v38 = vld [vmem:[%s8404_s1 + $0x484] ss:$48 sps:$4 sm:$0xff]   ;;  %v5674_v41 = vld [vmem:[%s8404_s1 + $0x480] ss:$48 sps:$4 sm:$0xff]  }
  0x16   :  { %2013 = vmatpush1.bf16.msra.mxu0 %v5707_v27  ;;  %v5726_v40 = vld [vmem:[%s8404_s1 + $0x2b4] ss:$48 sps:$4 sm:$0xff]   ;;  %v5731_v43 = vld [vmem:[%s8404_s1 + $0x2b0] ss:$48 sps:$4 sm:$0xff]  }
  0x17   :  { %1845 = vmatpush1.bf16.msra.mxu1 %v5653_v11  ;;  %2014 = vmatprep.subr.bf16.mxu0 %v5708_v28  ;;  %v5675_v42 = vld [vmem:[%s8404_s1 + $0x4e4] ss:$48 sps:$4 sm:$0xff]   ;;  %v5677_v45 = vld [vmem:[%s8404_s1 + $0x4e0] ss:$48 sps:$4 sm:$0xff]  }
  0x18   :  { %1846 = vmatprep.subr.bf16.mxu1 %v5654_v12  ;;  %v5732_v44 = vld [vmem:[%s8404_s1 + $0x314] ss:$48 sps:$4 sm:$0xff]   ;;  %v5737_v47 = vld [vmem:[%s8404_s1 + $0x310] ss:$48 sps:$4 sm:$0xff]  }
  0x19   :  { %v5678_v46 = vld [vmem:[%s8404_s1 + $0x544] ss:$48 sps:$4 sm:$0xff]   ;;  %v5680_v49 = vld [vmem:[%s8404_s1 + $0x540] ss:$48 sps:$4 sm:$0xff]  }
  0x1a   :  { %2015 = vmatpush1.bf16.msra.mxu0 %v5713_v31  ;;  %v5738_v48 = vld [vmem:[%s8404_s1 + $0x374] ss:$48 sps:$4 sm:$0xff]   ;;  %v5744_v51 = vld [vmem:[%s8404_s1 + $0x370] ss:$48 sps:$4 sm:$0xff]  }
  0x1b   :  { %1847 = vmatpush1.bf16.msra.mxu1 %v5656_v14  ;;  %2016 = vmatprep.subr.bf16.mxu0 %v5714_v32  ;;  %v5683_v50 = vld [vmem:[%s8404_s1 + $0x5a4] ss:$48 sps:$4 sm:$0xff]   ;;  %v5686_v53 = vld [vmem:[%s8404_s1 + $0x5a0] ss:$48 sps:$4 sm:$0xff]  }
  0x1c   :  { %1848 = vmatprep.subr.bf16.mxu1 %v5657_v15  ;;  %v5745_v52 = vld [vmem:[%s8404_s1 + $0x3d4] ss:$48 sps:$4 sm:$0xff]   ;;  %v5750_v55 = vld [vmem:[%s8404_s1 + $0x3d0] ss:$48 sps:$4 sm:$0xff]  }
  0x1d   :  { %v5693_v54 = vld [vmem:[%s8404_s1 + $0x604] ss:$48 sps:$4 sm:$0xff]   ;;  %v5691_v58 = vld [vmem:[%s8404_s1 + $0x600] ss:$48 sps:$4 sm:$0xff]  }
  0x1e   :  { %2017 = vmatpush1.bf16.msra.mxu0 %v5719_v35  ;;  %v5751_v56 = vld [vmem:[%s8404_s1 + $0x434] ss:$48 sps:$4 sm:$0xff]   ;;  %v5756_v60 = vld [vmem:[%s8404_s1 + $0x430] ss:$48 sps:$4 sm:$0xff]  }
  0x1f   :  { %1849 = vmatpush1.bf16.msra.mxu1 %v5659_v19  ;;  %2018 = vmatprep.subr.bf16.mxu0 %v5720_v36  ;;  %v5700_v59 = vld [vmem:[%s8404_s1 + $0x664] ss:$48 sps:$4 sm:$0xff]   ;;  %v5698_v62 = vld [vmem:[%s8404_s1 + $0x660] ss:$48 sps:$4 sm:$0xff]  }
  0x20   :  { %1850 = vmatprep.subr.bf16.mxu1 %v5660_v22  ;;  %v5757_v61 = vld [vmem:[%s8404_s1 + $0x494] ss:$48 sps:$4 sm:$0xff]   ;;  %v5762_v1 = vld [vmem:[%s8404_s1 + $0x490] ss:$48 sps:$4 sm:$0xff]  }
  0x21   :  { %v5706_v0 = vld [vmem:[%s8404_s1 + $0x6c4] ss:$48 sps:$4 sm:$0xff]   ;;  %v5704_v3 = vld [vmem:[%s8404_s1 + $0x6c0] ss:$48 sps:$4 sm:$0xff]  }
  0x22   :  { %2019 = vmatpush1.bf16.msra.mxu0 %v5725_v39  ;;  %v5763_v2 = vld [vmem:[%s8404_s1 + $0x4f4] ss:$48 sps:$4 sm:$0xff]   ;;  %v5768_v5 = vld [vmem:[%s8404_s1 + $0x4f0] ss:$48 sps:$4 sm:$0xff]  }
  0x23   :  { %1851 = vmatpush1.bf16.msra.mxu1 %v5662_v25  ;;  %2020 = vmatprep.subr.bf16.mxu0 %v5726_v40  ;;  %v5712_v4 = vld [vmem:[%s8404_s1 + $0x724] ss:$48 sps:$4 sm:$0xff]   ;;  %v5710_v7 = vld [vmem:[%s8404_s1 + $0x720] ss:$48 sps:$4 sm:$0xff]   ;;  %v5743_v25 = vld [vmem:[%s8404_s1 + $0xc] ss:$48 sps:$4 sm:$0xff]  }
  0x24   :  { %1852 = vmatprep.subr.bf16.mxu1 %v5663_v26  ;;  %v5769_v6 = vld [vmem:[%s8404_s1 + $0x554] ss:$48 sps:$4 sm:$0xff]   ;;  %v5774_v9 = vld [vmem:[%s8404_s1 + $0x550] ss:$48 sps:$4 sm:$0xff]  }
  0x25   :  { %v5718_v8 = vld [vmem:[%s8404_s1 + $0x784] ss:$48 sps:$4 sm:$0xff]   ;;  %v5716_v11 = vld [vmem:[%s8404_s1 + $0x780] ss:$48 sps:$4 sm:$0xff]  }
  0x26   :  { %2021 = vmatpush1.bf16.msra.mxu0 %v5731_v43  ;;  %v5775_v10 = vld [vmem:[%s8404_s1 + $0x5b4] ss:$48 sps:$4 sm:$0xff]   ;;  %v5780_v13 = vld [vmem:[%s8404_s1 + $0x5b0] ss:$48 sps:$4 sm:$0xff]  }
  0x27   :  { %1853 = vmatpush1.bf16.msra.mxu1 %v5665_v29  ;;  %2022 = vmatprep.subr.bf16.mxu0 %v5732_v44  ;;  %v5724_v12 = vld [vmem:[%s8404_s1 + $0x7e4] ss:$48 sps:$4 sm:$0xff]   ;;  %v5722_v15 = vld [vmem:[%s8404_s1 + $0x7e0] ss:$48 sps:$4 sm:$0xff]   ;;  %v5741_v29 = vld [vmem:[%s8404_s1 + $0x8] ss:$48 sps:$4 sm:$0xff]  }
  0x28   :  { %1854 = vmatprep.subr.bf16.mxu1 %v5666_v30  ;;  %v5783_v14 = vld [vmem:[%s8404_s1 + $0x614] ss:$48 sps:$4 sm:$0xff]   ;;  %v5781_v17 = vld [vmem:[%s8404_s1 + $0x610] ss:$48 sps:$4 sm:$0xff]   ;;  %v5749_v30 = vld [vmem:[%s8404_s1 + $0x6c] ss:$48 sps:$4 sm:$0xff]  }
  0x29   :  { %v5730_v16 = vld [vmem:[%s8404_s1 + $0x844] ss:$48 sps:$4 sm:$0xff]   ;;  %v5728_v20 = vld [vmem:[%s8404_s1 + $0x840] ss:$48 sps:$4 sm:$0xff]  }
  0x2a   :  { %2023 = vmatpush1.bf16.msra.mxu0 %v5737_v47  ;;  %v5789_v19 = vld [vmem:[%s8404_s1 + $0x674] ss:$48 sps:$4 sm:$0xff]   ;;  %v5787_v22 = vld [vmem:[%s8404_s1 + $0x670] ss:$48 sps:$4 sm:$0xff]  }
  0x2b   :  { %1855 = vmatpush1.bf16.msra.mxu1 %v5668_v33  ;;  %2024 = vmatprep.subr.bf16.mxu0 %v5738_v48  ;;  %v5736_v21 = vld [vmem:[%s8404_s1 + $0x8a4] ss:$48 sps:$4 sm:$0xff]   ;;  %v5734_v24 = vld [vmem:[%s8404_s1 + $0x8a0] ss:$48 sps:$4 sm:$0xff]   ;;  %v5747_v33 = vld [vmem:[%s8404_s1 + $0x68] ss:$48 sps:$4 sm:$0xff]  }
  0x2c   :  { %1856 = vmatprep.subr.bf16.mxu1 %v5669_v34  ;;  %v5795_v23 = vld [vmem:[%s8404_s1 + $0x6d4] ss:$48 sps:$4 sm:$0xff]   ;;  %v5793_v26 = vld [vmem:[%s8404_s1 + $0x6d0] ss:$48 sps:$4 sm:$0xff]   ;;  %v5755_v34 = vld [vmem:[%s8404_s1 + $0xcc] ss:$48 sps:$4 sm:$0xff]  }
  0x2d   :  { %v5801_v27 = vld [vmem:[%s8404_s1 + $0x734] ss:$48 sps:$4 sm:$0xff]   ;;  %v5799_v31 = vld [vmem:[%s8404_s1 + $0x730] ss:$48 sps:$4 sm:$0xff]  }
  0x2e   :  { %2025 = vmatpush1.bf16.msra.mxu0 %v5744_v51  ;;  %v6801_v28 = vld [vmem:[%s8403_s0 + $0x8] ss:$12 sps:$4 sm:$0xff]   ;;  %v5805_v35 = vld [vmem:[%s8404_s1 + $0x790] ss:$48 sps:$4 sm:$0xff]  }
  0x2f   :  { %1857 = vmatpush1.bf16.msra.mxu1 %v5671_v37  ;;  %2026 = vmatprep.subr.bf16.mxu0 %v5745_v52  ;;  %v5807_v32 = vld [vmem:[%s8404_s1 + $0x794] ss:$48 sps:$4 sm:$0xff]   ;;  %v5753_v37 = vld [vmem:[%s8404_s1 + $0xc8] ss:$48 sps:$4 sm:$0xff]   ;;  %v5811_v39 = vld [vmem:[%s8404_s1 + $0x7f0] ss:$48 sps:$4 sm:$0xff]  }
  0x30   :  { %1858 = vmatprep.subr.bf16.mxu1 %v5672_v38  ;;  %v5813_v36 = vld [vmem:[%s8404_s1 + $0x7f4] ss:$48 sps:$4 sm:$0xff]   ;;  %v5761_v38 = vld [vmem:[%s8404_s1 + $0x12c] ss:$48 sps:$4 sm:$0xff]   ;;  %v5817_v43 = vld [vmem:[%s8404_s1 + $0x850] ss:$48 sps:$4 sm:$0xff]  }
  0x31   :  { %v5819_v40 = vld [vmem:[%s8404_s1 + $0x854] ss:$48 sps:$4 sm:$0xff]   ;;  %v5823_v47 = vld [vmem:[%s8404_s1 + $0x8b0] ss:$48 sps:$4 sm:$0xff]  }
  0x32   :  { %2027 = vmatpush1.bf16.msra.mxu0 %v5750_v55  ;;  %v5825_v44 = vld [vmem:[%s8404_s1 + $0x8b4] ss:$48 sps:$4 sm:$0xff]   ;;  %v5829_v51 = vld [vmem:[%s8404_s1 + $0x20] ss:$48 sps:$4 sm:$0xff]  }
  0x33   :  { %1859 = vmatpush1.bf16.msra.mxu1 %v5674_v41  ;;  %2028 = vmatprep.subr.bf16.mxu0 %v5751_v56  ;;  %v5759_v41 = vld [vmem:[%s8404_s1 + $0x128] ss:$48 sps:$4 sm:$0xff]   ;;  %v5831_v48 = vld [vmem:[%s8404_s1 + $0x24] ss:$48 sps:$4 sm:$0xff]   ;;  %v5835_v55 = vld [vmem:[%s8404_s1 + $0x80] ss:$48 sps:$4 sm:$0xff]  }
  0x34   :  { %1860 = vmatprep.subr.bf16.mxu1 %v5675_v42  ;;  %v5767_v42 = vld [vmem:[%s8404_s1 + $0x18c] ss:$48 sps:$4 sm:$0xff]   ;;  %v5837_v52 = vld [vmem:[%s8404_s1 + $0x84] ss:$48 sps:$4 sm:$0xff]  }
  0x35   :  { %v5843_v56 = vld [vmem:[%s8404_s1 + $0xe4] ss:$48 sps:$4 sm:$0xff]  }
  0x36   :  { %2029 = vmatpush1.bf16.msra.mxu0 %v5756_v60  ;;  %v5841_v60 = vld [vmem:[%s8404_s1 + $0xe0] ss:$48 sps:$4 sm:$0xff]  }
  0x37   :  { %1861 = vmatpush1.bf16.msra.mxu1 %v5677_v45  ;;  %2030 = vmatprep.subr.bf16.mxu0 %v5757_v61  ;;  %v5765_v45 = vld [vmem:[%s8404_s1 + $0x188] ss:$48 sps:$4 sm:$0xff]  }
  0x38   :  { %1862 = vmatprep.subr.bf16.mxu1 %v5678_v46  ;;  %v5773_v46 = vld [vmem:[%s8404_s1 + $0x1ec] ss:$48 sps:$4 sm:$0xff]   ;;  %v5790_v61 = vld [vmem:[%s8404_s1 + $0x308] ss:$48 sps:$4 sm:$0xff]  }
  0x3a   :  { %2031 = vmatpush1.bf16.msra.mxu0 %v5762_v1  ;;  %v5855_v1 = vld [vmem:[%s8404_s1 + $0x1a4] ss:$48 sps:$4 sm:$0xff]  }
  0x3b   :  { %1863 = vmatpush1.bf16.msra.mxu1 %v5680_v49  ;;  %2032 = vmatprep.subr.bf16.mxu0 %v5763_v2  ;;  %v5771_v49 = vld [vmem:[%s8404_s1 + $0x1e8] ss:$48 sps:$4 sm:$0xff]  }
  0x3c   :  { %1864 = vmatprep.subr.bf16.mxu1 %v5683_v50  ;;  %v5779_v50 = vld [vmem:[%s8404_s1 + $0x24c] ss:$48 sps:$4 sm:$0xff]   ;;  %v5796_v2 = vld [vmem:[%s8404_s1 + $0x368] ss:$48 sps:$4 sm:$0xff]  }
  0x3e   :  { %2033 = vmatpush1.bf16.msra.mxu0 %v5768_v5  ;;  %v5861_v5 = vld [vmem:[%s8404_s1 + $0x204] ss:$48 sps:$4 sm:$0xff]  }
  0x3f   :  { %1865 = vmatpush1.bf16.msra.mxu1 %v5686_v53  ;;  %2034 = vmatprep.subr.bf16.mxu0 %v5769_v6  ;;  %v5777_v53 = vld [vmem:[%s8404_s1 + $0x248] ss:$48 sps:$4 sm:$0xff]  }
  0x40   :  { %1877 = vmatprep.subr.bf16.mxu1 %v5693_v54  ;;  %v5786_v54 = vld [vmem:[%s8404_s1 + $0x2ac] ss:$48 sps:$4 sm:$0xff]   ;;  %v5802_v6 = vld [vmem:[%s8404_s1 + $0x3c8] ss:$48 sps:$4 sm:$0xff]  }
  0x42   :  { %1867 = vmatmul.mubr.bf16.vlgmr.msra.gmra.mrb[0].mxu1 %v6696_v57  ;;  %2035 = vmatpush1.bf16.msra.mxu0 %v5774_v9  ;;  %v5867_v9 = vld [vmem:[%s8404_s1 + $0x264] ss:$48 sps:$4 sm:$0xff]  }
  0x43   :  { %1878 = vmatpush1.bf16.msra.mxu1 %v5691_v58  ;;  %1909 = vmatprep.mubr.bf16.mxu1 %v6484_v63  ;;  %v5784_v58 = vld [vmem:[%s8404_s1 + $0x2a8] ss:$48 sps:$4 sm:$0xff]  }
  0x44   :  { %1879 = vmatprep.subr.bf16.mxu1 %v5700_v59  ;;  %2036 = vmatprep.subr.bf16.mxu0 %v5775_v10  ;;  %v5792_v59 = vld [vmem:[%s8404_s1 + $0x30c] ss:$48 sps:$4 sm:$0xff]   ;;  %v5808_v10 = vld [vmem:[%s8404_s1 + $0x428] ss:$48 sps:$4 sm:$0xff]  }
  0x46   :  { %2037 = vmatpush1.bf16.msra.mxu0 %v5780_v13  ;;  %v5873_v13 = vld [vmem:[%s8404_s1 + $0x2c4] ss:$48 sps:$4 sm:$0xff]  }
  0x47   :  { %1880 = vmatpush1.bf16.msra.mxu1 %v5698_v62  ;;  %2049 = vmatprep.subr.bf16.mxu0 %v5783_v14  ;;  %v5798_v62 = vld [vmem:[%s8404_s1 + $0x36c] ss:$48 sps:$4 sm:$0xff]   ;;  %v5814_v14 = vld [vmem:[%s8404_s1 + $0x488] ss:$48 sps:$4 sm:$0xff]  }
  0x48   :  { %1881 = vmatprep.subr.bf16.mxu1 %v5706_v0  ;;  %v5847_v0 = vld [vmem:[%s8404_s1 + $0x140] ss:$48 sps:$4 sm:$0xff]  }
  0x49   :  { %2039 = vmatmul.mubr.bf16.vlgmr.msra.gmra.mrb[0].mxu0 %v6696_v57 }
  0x4a   :  { %2050 = vmatpush1.bf16.msra.mxu0 %v5781_v17  ;;  %2081 = vmatprep.mubr.bf16.mxu0 %v6484_v63  ;;  %v5879_v17 = vld [vmem:[%s8404_s1 + $0x324] ss:$48 sps:$4 sm:$0xff]  }
  0x4b   :  { %1882 = vmatpush1.bf16.msra.mxu1 %v5704_v3  ;;  %2051 = vmatprep.subr.bf16.mxu0 %v5789_v19  ;;  %v5804_v3 = vld [vmem:[%s8404_s1 + $0x3cc] ss:$48 sps:$4 sm:$0xff]   ;;  %v5820_v19 = vld [vmem:[%s8404_s1 + $0x4e8] ss:$48 sps:$4 sm:$0xff]  }
  0x4c   :  { %1883 = vmatprep.subr.bf16.mxu1 %v5712_v4  ;;  %v5853_v4 = vld [vmem:[%s8404_s1 + $0x1a0] ss:$48 sps:$4 sm:$0xff]  }
  0x4e   :  { %2052 = vmatpush1.bf16.msra.mxu0 %v5787_v22  ;;  %v5885_v22 = vld [vmem:[%s8404_s1 + $0x384] ss:$48 sps:$4 sm:$0xff]  }
  0x4f   :  { %1884 = vmatpush1.bf16.msra.mxu1 %v5710_v7  ;;  %2053 = vmatprep.subr.bf16.mxu0 %v5795_v23  ;;  %v5810_v7 = vld [vmem:[%s8404_s1 + $0x42c] ss:$48 sps:$4 sm:$0xff]   ;;  %v5826_v23 = vld [vmem:[%s8404_s1 + $0x548] ss:$48 sps:$4 sm:$0xff]  }
  0x50   :  { %1885 = vmatprep.subr.bf16.mxu1 %v5718_v8  ;;  %v5859_v8 = vld [vmem:[%s8404_s1 + $0x200] ss:$48 sps:$4 sm:$0xff]  }
  0x52   :  { %2054 = vmatpush1.bf16.msra.mxu0 %v5793_v26  ;;  %v5891_v26 = vld [vmem:[%s8404_s1 + $0x3e4] ss:$48 sps:$4 sm:$0xff]  }
  0x53   :  { %1886 = vmatpush1.bf16.msra.mxu1 %v5716_v11  ;;  %2055 = vmatprep.subr.bf16.mxu0 %v5801_v27  ;;  %v5816_v11 = vld [vmem:[%s8404_s1 + $0x48c] ss:$48 sps:$4 sm:$0xff]   ;;  %v5832_v27 = vld [vmem:[%s8404_s1 + $0x5a8] ss:$48 sps:$4 sm:$0xff]  }
  0x54   :  { %1887 = vmatprep.subr.bf16.mxu1 %v5724_v12  ;;  %v5865_v12 = vld [vmem:[%s8404_s1 + $0x260] ss:$48 sps:$4 sm:$0xff]  }
  0x56   :  { %2056 = vmatpush1.bf16.msra.mxu0 %v5799_v31  ;;  %v5897_v31 = vld [vmem:[%s8404_s1 + $0x444] ss:$48 sps:$4 sm:$0xff]  }
  0x57   :  { %1888 = vmatpush1.bf16.msra.mxu1 %v5722_v15  ;;  %2057 = vmatprep.subr.bf16.mxu0 %v5807_v32  ;;  %v5822_v15 = vld [vmem:[%s8404_s1 + $0x4ec] ss:$48 sps:$4 sm:$0xff]   ;;  %v5838_v32 = vld [vmem:[%s8404_s1 + $0x608] ss:$48 sps:$4 sm:$0xff]  }
  0x58   :  { %1889 = vmatprep.subr.bf16.mxu1 %v5730_v16  ;;  %v5871_v16 = vld [vmem:[%s8404_s1 + $0x2c0] ss:$48 sps:$4 sm:$0xff]  }
  0x5a   :  { %2058 = vmatpush1.bf16.msra.mxu0 %v5805_v35  ;;  %v5903_v35 = vld [vmem:[%s8404_s1 + $0x4a4] ss:$48 sps:$4 sm:$0xff]  }
  0x5b   :  { %1890 = vmatpush1.bf16.msra.mxu1 %v5728_v20  ;;  %2059 = vmatprep.subr.bf16.mxu0 %v5813_v36  ;;  %v5828_v20 = vld [vmem:[%s8404_s1 + $0x54c] ss:$48 sps:$4 sm:$0xff]   ;;  %v5844_v36 = vld [vmem:[%s8404_s1 + $0x668] ss:$48 sps:$4 sm:$0xff]  }
  0x5c   :  { %1891 = vmatprep.subr.bf16.mxu1 %v5736_v21  ;;  %v5877_v21 = vld [vmem:[%s8404_s1 + $0x320] ss:$48 sps:$4 sm:$0xff]  }
  0x5e   :  { %2060 = vmatpush1.bf16.msra.mxu0 %v5811_v39  ;;  %v5909_v39 = vld [vmem:[%s8404_s1 + $0x504] ss:$48 sps:$4 sm:$0xff]  }
  0x5f   :  { %1892 = vmatpush1.bf16.msra.mxu1 %v5734_v24  ;;  %2061 = vmatprep.subr.bf16.mxu0 %v5819_v40  ;;  %v5834_v24 = vld [vmem:[%s8404_s1 + $0x5ac] ss:$48 sps:$4 sm:$0xff]   ;;  %v5850_v40 = vld [vmem:[%s8404_s1 + $0x6c8] ss:$48 sps:$4 sm:$0xff]  }
  0x60   :  { %1920 = vmatprep.subr.bf16.mxu1 %v5743_v25  ;;  %v5883_v25 = vld [vmem:[%s8404_s1 + $0x380] ss:$48 sps:$4 sm:$0xff]  }
  0x62   :  { %1910 = vmatmul.mubr.bf16.vlgmr.msra.gmra.mrb[0].mxu1 %v6801_v28  ;;  %2062 = vmatpush1.bf16.msra.mxu0 %v5817_v43  ;;  %v5915_v43 = vld [vmem:[%s8404_s1 + $0x564] ss:$48 sps:$4 sm:$0xff]  }
  0x63   :  { %1921 = vmatpush1.bf16.msra.mxu1 %v5741_v29  ;;  %1952 = vmatprep.mubr.bf16.mxu1 %v6575_v18  ;;  %v5840_v29 = vld [vmem:[%s8404_s1 + $0x60c] ss:$48 sps:$4 sm:$0xff]  }
  0x64   :  { %1922 = vmatprep.subr.bf16.mxu1 %v5749_v30  ;;  %2063 = vmatprep.subr.bf16.mxu0 %v5825_v44  ;;  %v5889_v30 = vld [vmem:[%s8404_s1 + $0x3e0] ss:$48 sps:$4 sm:$0xff]   ;;  %v5856_v44 = vld [vmem:[%s8404_s1 + $0x728] ss:$48 sps:$4 sm:$0xff]  }
  0x66   :  { %2064 = vmatpush1.bf16.msra.mxu0 %v5823_v47  ;;  %v5921_v47 = vld [vmem:[%s8404_s1 + $0x5c4] ss:$48 sps:$4 sm:$0xff]  }
  0x67   :  { %1923 = vmatpush1.bf16.msra.mxu1 %v5747_v33  ;;  %2178 = vmatprep.subr.bf16.mxu0 %v5831_v48  ;;  %v5846_v33 = vld [vmem:[%s8404_s1 + $0x66c] ss:$48 sps:$4 sm:$0xff]   ;;  %v5862_v48 = vld [vmem:[%s8404_s1 + $0x788] ss:$48 sps:$4 sm:$0xff]  }
  0x68   :  { %1924 = vmatprep.subr.bf16.mxu1 %v5755_v34  ;;  %v5895_v34 = vld [vmem:[%s8404_s1 + $0x440] ss:$48 sps:$4 sm:$0xff]  }
  0x69   :  { %2082 = vmatmul.mubr.bf16.vlgmr.msra.gmra.mrb[0].mxu0 %v6801_v28 }
  0x6a   :  { %2179 = vmatpush1.bf16.msra.mxu0 %v5829_v51  ;;  %2210 = vmatprep.mubr.bf16.mxu0 %v6575_v18  ;;  %v5849_v18 = vld [vmem:[%s8404_s1 + $0x144] ss:$48 sps:$4 sm:$0xff]  }
  0x6b   :  { %1925 = vmatpush1.bf16.msra.mxu1 %v5753_v37  ;;  %2180 = vmatprep.subr.bf16.mxu0 %v5837_v52  ;;  %v5852_v37 = vld [vmem:[%s8404_s1 + $0x6cc] ss:$48 sps:$4 sm:$0xff]   ;;  %v5927_v51 = vld [vmem:[%s8404_s1 + $0x624] ss:$48 sps:$4 sm:$0xff]   ;;  %v5868_v52 = vld [vmem:[%s8404_s1 + $0x7e8] ss:$48 sps:$4 sm:$0xff]  }
  0x6c   :  { %1926 = vmatprep.subr.bf16.mxu1 %v5761_v38  ;;  %v5901_v38 = vld [vmem:[%s8404_s1 + $0x4a0] ss:$48 sps:$4 sm:$0xff]  }
  0x6e   :  { %2181 = vmatpush1.bf16.msra.mxu0 %v5835_v55  ;;  %v5933_v55 = vld [vmem:[%s8404_s1 + $0x684] ss:$48 sps:$4 sm:$0xff]  }
  0x6f   :  { %1927 = vmatpush1.bf16.msra.mxu1 %v5759_v41  ;;  %2182 = vmatprep.subr.bf16.mxu0 %v5843_v56  ;;  %v5858_v41 = vld [vmem:[%s8404_s1 + $0x72c] ss:$48 sps:$4 sm:$0xff]   ;;  %v5874_v56 = vld [vmem:[%s8404_s1 + $0x848] ss:$48 sps:$4 sm:$0xff]  }
  0x70   :  { %1928 = vmatprep.subr.bf16.mxu1 %v5767_v42  ;;  %v5907_v42 = vld [vmem:[%s8404_s1 + $0x500] ss:$48 sps:$4 sm:$0xff]  }
  0x72   :  { %2183 = vmatpush1.bf16.msra.mxu0 %v5841_v60  ;;  %v5939_v60 = vld [vmem:[%s8404_s1 + $0x6e4] ss:$48 sps:$4 sm:$0xff]  }
  0x73   :  { %1929 = vmatpush1.bf16.msra.mxu1 %v5765_v45  ;;  %2184 = vmatprep.subr.bf16.mxu0 %v5849_v18  ;;  %v5864_v45 = vld [vmem:[%s8404_s1 + $0x78c] ss:$48 sps:$4 sm:$0xff]  }
  0x74   :  { %1930 = vmatprep.subr.bf16.mxu1 %v5773_v46  ;;  %v5913_v46 = vld [vmem:[%s8404_s1 + $0x560] ss:$48 sps:$4 sm:$0xff]   ;;  %v5888_v18 = vld [vmem:[%s8404_s1 + $0x1c] ss:$48 sps:$4 sm:$0xff]  }
  0x76   :  { %2185 = vmatpush1.bf16.msra.mxu0 %v5847_v0  ;;  %v5886_v0 = vld [vmem:[%s8404_s1 + $0x18] ss:$48 sps:$4 sm:$0xff]  }
  0x77   :  { %1931 = vmatpush1.bf16.msra.mxu1 %v5771_v49  ;;  %2186 = vmatprep.subr.bf16.mxu0 %v5855_v1  ;;  %v5870_v49 = vld [vmem:[%s8404_s1 + $0x7ec] ss:$48 sps:$4 sm:$0xff]  }
  0x78   :  { %1932 = vmatprep.subr.bf16.mxu1 %v5779_v50  ;;  %v5919_v50 = vld [vmem:[%s8404_s1 + $0x5c0] ss:$48 sps:$4 sm:$0xff]   ;;  %v5894_v1 = vld [vmem:[%s8404_s1 + $0x7c] ss:$48 sps:$4 sm:$0xff]  }
  0x7a   :  { %2187 = vmatpush1.bf16.msra.mxu0 %v5853_v4  ;;  %v5892_v4 = vld [vmem:[%s8404_s1 + $0x78] ss:$48 sps:$4 sm:$0xff]  }
  0x7b   :  { %1933 = vmatpush1.bf16.msra.mxu1 %v5777_v53  ;;  %2188 = vmatprep.subr.bf16.mxu0 %v5861_v5  ;;  %v5876_v53 = vld [vmem:[%s8404_s1 + $0x84c] ss:$48 sps:$4 sm:$0xff]  }
  0x7c   :  { %1934 = vmatprep.subr.bf16.mxu1 %v5786_v54  ;;  %v5925_v54 = vld [vmem:[%s8404_s1 + $0x620] ss:$48 sps:$4 sm:$0xff]   ;;  %v5900_v5 = vld [vmem:[%s8404_s1 + $0xdc] ss:$48 sps:$4 sm:$0xff]  }
  0x7e   :  { %2189 = vmatpush1.bf16.msra.mxu0 %v5859_v8  ;;  %v5898_v8 = vld [vmem:[%s8404_s1 + $0xd8] ss:$48 sps:$4 sm:$0xff]  }
  0x7f   :  { %1935 = vmatpush1.bf16.msra.mxu1 %v5784_v58  ;;  %2190 = vmatprep.subr.bf16.mxu0 %v5867_v9  ;;  %v5882_v58 = vld [vmem:[%s8404_s1 + $0x8ac] ss:$48 sps:$4 sm:$0xff]   ;;  %v5957_v9 = vld [vmem:[%s8404_s1 + $0x804] ss:$48 sps:$4 sm:$0xff]  }
  0x80   :  { %1936 = vmatprep.subr.bf16.mxu1 %v5792_v59  ;;  %v5931_v59 = vld [vmem:[%s8404_s1 + $0x680] ss:$48 sps:$4 sm:$0xff]  }
  0x82   :  { %2191 = vmatpush1.bf16.msra.mxu0 %v5865_v12  ;;  %v5963_v12 = vld [vmem:[%s8404_s1 + $0x864] ss:$48 sps:$4 sm:$0xff]  }
  0x83   :  { %1937 = vmatpush1.bf16.msra.mxu1 %v5790_v61  ;;  %2192 = vmatprep.subr.bf16.mxu0 %v5873_v13  ;;  %v5937_v61 = vld [vmem:[%s8404_s1 + $0x6e0] ss:$48 sps:$4 sm:$0xff]   ;;  %v5904_v13 = vld [vmem:[%s8404_s1 + $0x138] ss:$48 sps:$4 sm:$0xff]  }
  0x84   :  { %1938 = vmatprep.subr.bf16.mxu1 %v5798_v62  ;;  %v5945_v62 = vld [vmem:[%s8404_s1 + $0x744] ss:$48 sps:$4 sm:$0xff]  }
  0x86   :  { %2193 = vmatpush1.bf16.msra.mxu0 %v5871_v16  ;;  %v5969_v16 = vld [vmem:[%s8404_s1 + $0x8c4] ss:$48 sps:$4 sm:$0xff]  }
  0x87   :  { %1939 = vmatpush1.bf16.msra.mxu1 %v5796_v2  ;;  %2194 = vmatprep.subr.bf16.mxu0 %v5879_v17  ;;  %v5943_v2 = vld [vmem:[%s8404_s1 + $0x740] ss:$48 sps:$4 sm:$0xff]   ;;  %v5910_v17 = vld [vmem:[%s8404_s1 + $0x198] ss:$48 sps:$4 sm:$0xff]  }
  0x88   :  { %1940 = vmatprep.subr.bf16.mxu1 %v5804_v3  ;;  %v5951_v3 = vld [vmem:[%s8404_s1 + $0x7a4] ss:$48 sps:$4 sm:$0xff]  }
  0x8a   :  { %2195 = vmatpush1.bf16.msra.mxu0 %v5877_v21  ;;  %v5978_v21 = vld [vmem:[%s8406_s3 + $0x4] ss:$12 sps:$4 sm:$0xff]  }
  0x8b   :  { %1941 = vmatpush1.bf16.msra.mxu1 %v5802_v6  ;;  %2196 = vmatprep.subr.bf16.mxu0 %v5885_v22  ;;  %v7121_v6 = vld [vmem:[%s8403_s0 + $0x4] ss:$12 sps:$4 sm:$0xff]   ;;  %v5916_v22 = vld [vmem:[%s8404_s1 + $0x1f8] ss:$48 sps:$4 sm:$0xff]  }
  0x8c   :  { %1942 = vmatprep.subr.bf16.mxu1 %v5810_v7  ;;  %v5949_v7 = vld [vmem:[%s8404_s1 + $0x7a0] ss:$48 sps:$4 sm:$0xff]  }
  0x8e   :  { %2197 = vmatpush1.bf16.msra.mxu0 %v5883_v25  ;;  %v5984_v25 = vld [vmem:[%s8406_s3 + $0x1c] ss:$12 sps:$4 sm:$0xff]  }
  0x8f   :  { %1943 = vmatpush1.bf16.msra.mxu1 %v5808_v10  ;;  %2198 = vmatprep.subr.bf16.mxu0 %v5891_v26  ;;  %v5906_v10 = vld [vmem:[%s8404_s1 + $0x13c] ss:$48 sps:$4 sm:$0xff]   ;;  %v5922_v26 = vld [vmem:[%s8404_s1 + $0x258] ss:$48 sps:$4 sm:$0xff]  }
  0x90   :  { %1944 = vmatprep.subr.bf16.mxu1 %v5816_v11  ;;  %v5955_v11 = vld [vmem:[%s8404_s1 + $0x800] ss:$48 sps:$4 sm:$0xff]  }
  0x92   :  { %2199 = vmatpush1.bf16.msra.mxu0 %v5889_v30  ;;  %v5990_v30 = vld [vmem:[%s8406_s3 + $0x34] ss:$12 sps:$4 sm:$0xff]  }
  0x93   :  { %1945 = vmatpush1.bf16.msra.mxu1 %v5814_v14  ;;  %2200 = vmatprep.subr.bf16.mxu0 %v5897_v31  ;;  %v5912_v14 = vld [vmem:[%s8404_s1 + $0x19c] ss:$48 sps:$4 sm:$0xff]   ;;  %v5928_v31 = vld [vmem:[%s8404_s1 + $0x2b8] ss:$48 sps:$4 sm:$0xff]  }
  0x94   :  { %1946 = vmatprep.subr.bf16.mxu1 %v5822_v15  ;;  %v5961_v15 = vld [vmem:[%s8404_s1 + $0x860] ss:$48 sps:$4 sm:$0xff]  }
  0x96   :  { %2201 = vmatpush1.bf16.msra.mxu0 %v5895_v34  ;;  %v5934_v34 = vld [vmem:[%s8404_s1 + $0x318] ss:$48 sps:$4 sm:$0xff]  }
  0x97   :  { %1947 = vmatpush1.bf16.msra.mxu1 %v5820_v19  ;;  %2202 = vmatprep.subr.bf16.mxu0 %v5903_v35  ;;  %v5918_v19 = vld [vmem:[%s8404_s1 + $0x1fc] ss:$48 sps:$4 sm:$0xff]  }
  0x98   :  { %1948 = vmatprep.subr.bf16.mxu1 %v5828_v20  ;;  %v5967_v20 = vld [vmem:[%s8404_s1 + $0x8c0] ss:$48 sps:$4 sm:$0xff]   ;;  %v5942_v35 = vld [vmem:[%s8404_s1 + $0x37c] ss:$48 sps:$4 sm:$0xff]  }
  0x9a   :  { %2203 = vmatpush1.bf16.msra.mxu0 %v5901_v38  ;;  %v5940_v38 = vld [vmem:[%s8404_s1 + $0x378] ss:$48 sps:$4 sm:$0xff]  }
  0x9b   :  { %1949 = vmatpush1.bf16.msra.mxu1 %v5826_v23  ;;  %2204 = vmatprep.subr.bf16.mxu0 %v5909_v39  ;;  %v5924_v23 = vld [vmem:[%s8404_s1 + $0x25c] ss:$48 sps:$4 sm:$0xff]  }
  0x9c   :  { %1950 = vmatprep.subr.bf16.mxu1 %v5834_v24  ;;  %v5976_v24 = vld [vmem:[%s8406_s3] ss:$12 sps:$4 sm:$0xff]  }
  0x9d   :  { %v5948_v39 = vld [vmem:[%s8404_s1 + $0x3dc] ss:$48 sps:$4 sm:$0xff]  }
  0x9e   :  { %2205 = vmatpush1.bf16.msra.mxu0 %v5907_v42  ;;  %v5946_v42 = vld [vmem:[%s8404_s1 + $0x3d8] ss:$48 sps:$4 sm:$0xff]  }
  0x9f   :  { %1951 = vmatpush1.bf16.msra.mxu1 %v5832_v27  ;;  %2206 = vmatprep.subr.bf16.mxu0 %v5915_v43  ;;  %v5930_v27 = vld [vmem:[%s8404_s1 + $0x2bc] ss:$48 sps:$4 sm:$0xff]  }
  0xa0   :  { %1963 = vmatprep.subr.bf16.mxu1 %v5840_v29  ;;  %v5982_v29 = vld [vmem:[%s8406_s3 + $0x18] ss:$12 sps:$4 sm:$0xff]   ;;  %v5954_v43 = vld [vmem:[%s8404_s1 + $0x43c] ss:$48 sps:$4 sm:$0xff]  }
  0xa2   :  { %1953 = vmatmul.mubr.bf16.vlgmr.msra.gmra.mrb[4].mxu1 %v6696_v57  ;;  %2207 = vmatpush1.bf16.msra.mxu0 %v5913_v46  ;;  %v5952_v46 = vld [vmem:[%s8404_s1 + $0x438] ss:$48 sps:$4 sm:$0xff]  }
  0xa3   :  { %1964 = vmatpush1.bf16.msra.mxu1 %v5838_v32  ;;  %1995 = vmatprep.mubr.bf16.mxu1 %v6484_v63  ;;  %v5988_v32 = vld [vmem:[%s8406_s3 + $0x30] ss:$12 sps:$4 sm:$0xff]  }
  0xa4   :  { %1965 = vmatprep.subr.bf16.mxu1 %v5846_v33  ;;  %2208 = vmatprep.subr.bf16.mxu0 %v5921_v47  ;;  %v5996_v33 = vld [vmem:[%s8406_s3 + $0x4c] ss:$12 sps:$4 sm:$0xff]  }
  0xa5   :  { %v5960_v47 = vld [vmem:[%s8404_s1 + $0x49c] ss:$48 sps:$4 sm:$0xff]  }
  0xa6   :  { %2209 = vmatpush1.bf16.msra.mxu0 %v5919_v50  ;;  %v5958_v50 = vld [vmem:[%s8404_s1 + $0x498] ss:$48 sps:$4 sm:$0xff]  }
  0xa7   :  { %1966 = vmatpush1.bf16.msra.mxu1 %v5844_v36  ;;  %2221 = vmatprep.subr.bf16.mxu0 %v5927_v51  ;;  %v5994_v36 = vld [vmem:[%s8406_s3 + $0x48] ss:$12 sps:$4 sm:$0xff]   ;;  %v5966_v51 = vld [vmem:[%s8404_s1 + $0x4fc] ss:$48 sps:$4 sm:$0xff]  }
  0xa8   :  { %1967 = vmatprep.subr.bf16.mxu1 %v5852_v37  ;;  %v6002_v37 = vld [vmem:[%s8406_s3 + $0x64] ss:$12 sps:$4 sm:$0xff]  }
  0xa9   :  { %2211 = vmatmul.mubr.bf16.vlgmr.msra.gmra.mrb[4].mxu0 %v6696_v57  ;;  %v5880_v57 = vld [vmem:[%s8404_s1 + $0x8a8] ss:$48 sps:$4 sm:$0xff]  }
  0xaa   :  { %2222 = vmatpush1.bf16.msra.mxu0 %v5925_v54  ;;  %2253 = vmatprep.mubr.bf16.mxu0 %v6484_v63  ;;  %v5964_v54 = vld [vmem:[%s8404_s1 + $0x4f8] ss:$48 sps:$4 sm:$0xff]  }
  0xab   :  { %1968 = vmatpush1.bf16.msra.mxu1 %v5850_v40  ;;  %2223 = vmatprep.subr.bf16.mxu0 %v5933_v55  ;;  %v6000_v40 = vld [vmem:[%s8406_s3 + $0x60] ss:$12 sps:$4 sm:$0xff]  }
  0xac   :  { %1969 = vmatprep.subr.bf16.mxu1 %v5858_v41  ;;  %v6008_v41 = vld [vmem:[%s8406_s3 + $0x7c] ss:$12 sps:$4 sm:$0xff]  }
  0xad   :  { %v5972_v55 = vld [vmem:[%s8404_s1 + $0x55c] ss:$48 sps:$4 sm:$0xff]  }
  0xae   :  { %2224 = vmatpush1.bf16.msra.mxu0 %v5931_v59  ;;  %v5970_v59 = vld [vmem:[%s8404_s1 + $0x558] ss:$48 sps:$4 sm:$0xff]  }
  0xaf   :  { %1970 = vmatpush1.bf16.msra.mxu1 %v5856_v44  ;;  %2225 = vmatprep.subr.bf16.mxu0 %v5939_v60  ;;  %v6006_v44 = vld [vmem:[%s8406_s3 + $0x78] ss:$12 sps:$4 sm:$0xff]   ;;  %v5975_v60 = vld [vmem:[%s8404_s1 + $0x5bc] ss:$48 sps:$4 sm:$0xff]  }
  0xb0   :  { %1971 = vmatprep.subr.bf16.mxu1 %v5864_v45  ;;  %v6014_v45 = vld [vmem:[%s8406_s3 + $0x94] ss:$12 sps:$4 sm:$0xff]  }
  0xb2   :  { %2226 = vmatpush1.bf16.msra.mxu0 %v5937_v61  ;;  %v5973_v61 = vld [vmem:[%s8404_s1 + $0x5b8] ss:$48 sps:$4 sm:$0xff]  }
  0xb3   :  { %1972 = vmatpush1.bf16.msra.mxu1 %v5862_v48  ;;  %2227 = vmatprep.subr.bf16.mxu0 %v5945_v62  ;;  %v6012_v48 = vld [vmem:[%s8406_s3 + $0x90] ss:$12 sps:$4 sm:$0xff]  }
  0xb4   :  { %1973 = vmatprep.subr.bf16.mxu1 %v5870_v49  ;;  %v6020_v49 = vld [vmem:[%s8406_s3 + $0xac] ss:$12 sps:$4 sm:$0xff]  }
  0xb5   :  { %v5981_v62 = vld [vmem:[%s8404_s1 + $0x61c] ss:$48 sps:$4 sm:$0xff]  }
  0xb6   :  { %2228 = vmatpush1.bf16.msra.mxu0 %v5943_v2  ;;  %v6044_v2 = vld [vmem:[%s8406_s3 + $0x10c] ss:$12 sps:$4 sm:$0xff]  }
  0xb7   :  { %1974 = vmatpush1.bf16.msra.mxu1 %v5868_v52  ;;  %2229 = vmatprep.subr.bf16.mxu0 %v5951_v3  ;;  %v6018_v52 = vld [vmem:[%s8406_s3 + $0xa8] ss:$12 sps:$4 sm:$0xff]   ;;  %v5987_v3 = vld [vmem:[%s8404_s1 + $0x67c] ss:$48 sps:$4 sm:$0xff]  }
  0xb8   :  { %1975 = vmatprep.subr.bf16.mxu1 %v5876_v53  ;;  %v6026_v53 = vld [vmem:[%s8406_s3 + $0xc4] ss:$12 sps:$4 sm:$0xff]  }
  0xba   :  { %2230 = vmatpush1.bf16.msra.mxu0 %v5949_v7  ;;  %v7314_v7 = vld [vmem:[%s8403_s0] ss:$12 sps:$4 sm:$0xff]  }
  0xbb   :  { %1976 = vmatpush1.bf16.msra.mxu1 %v5874_v56  ;;  %2231 = vmatprep.subr.bf16.mxu0 %v5957_v9  ;;  %v6024_v56 = vld [vmem:[%s8406_s3 + $0xc0] ss:$12 sps:$4 sm:$0xff]  }
  0xbc   :  { %1977 = vmatprep.subr.bf16.mxu1 %v5882_v58  ;;  %v6032_v58 = vld [vmem:[%s8406_s3 + $0xdc] ss:$12 sps:$4 sm:$0xff]  }
  0xbd   :  { %v5993_v9 = vld [vmem:[%s8404_s1 + $0x6dc] ss:$48 sps:$4 sm:$0xff]  }
  0xbe   :  { %2232 = vmatpush1.bf16.msra.mxu0 %v5955_v11  ;;  %v6056_v11 = vld [vmem:[%s8406_s3 + $0x13c] ss:$12 sps:$4 sm:$0xff]  }
  0xbf   :  { %1978 = vmatpush1.bf16.msra.mxu1 %v5880_v57  ;;  %2233 = vmatprep.subr.bf16.mxu0 %v5963_v12  ;;  %v6030_v57 = vld [vmem:[%s8406_s3 + $0xd8] ss:$12 sps:$4 sm:$0xff]  }
  0xc0   :  { %2092 = vmatprep.subr.bf16.mxu1 %v5888_v18  ;;  %v6038_v18 = vld [vmem:[%s8406_s3 + $0xf4] ss:$12 sps:$4 sm:$0xff]   ;;  %v5991_v12 = vld [vmem:[%s8404_s1 + $0x6d8] ss:$48 sps:$4 sm:$0xff]  }
  0xc2   :  { %1996 = vmatmul.mubr.bf16.vlgmr.msra.gmra.mrb[4].mxu1 %v6801_v28  ;;  %2234 = vmatpush1.bf16.msra.mxu0 %v5961_v15  ;;  %v6062_v15 = vld [vmem:[%s8406_s3 + $0x154] ss:$12 sps:$4 sm:$0xff]  }
  0xc3   :  { %2093 = vmatpush1.bf16.msra.mxu1 %v5886_v0  ;;  %2124 = vmatprep.mubr.bf16.mxu1 %v7121_v6  ;;  %v6036_v0 = vld [vmem:[%s8406_s3 + $0xf0] ss:$12 sps:$4 sm:$0xff]  }
  0xc4   :  { %2094 = vmatprep.subr.bf16.mxu1 %v5894_v1  ;;  %2235 = vmatprep.subr.bf16.mxu0 %v5969_v16  ;;  %v5979_v1 = vld [vmem:[%s8404_s1 + $0x618] ss:$48 sps:$4 sm:$0xff]  }
  0xc5   :  { %v5997_v16 = vld [vmem:[%s8404_s1 + $0x738] ss:$48 sps:$4 sm:$0xff]  }
  0xc6   :  { %2236 = vmatpush1.bf16.msra.mxu0 %v5967_v20  ;;  %v6068_v20 = vld [vmem:[%s8406_s3 + $0x16c] ss:$12 sps:$4 sm:$0xff]  }
  0xc7   :  { %2095 = vmatpush1.bf16.msra.mxu1 %v5892_v4  ;;  %4323 = vmatprep.subr.bf16.mxu0 %v5978_v21  ;;  %v6042_v4 = vld [vmem:[%s8406_s3 + $0x108] ss:$12 sps:$4 sm:$0xff]  }
  0xc8   :  { %2096 = vmatprep.subr.bf16.mxu1 %v5900_v5  ;;  %v6050_v5 = vld [vmem:[%s8406_s3 + $0x124] ss:$12 sps:$4 sm:$0xff]   ;;  %v6003_v21 = vld [vmem:[%s8404_s1 + $0x798] ss:$48 sps:$4 sm:$0xff]  }
  0xc9   :  { %2254 = vmatmul.mubr.bf16.vlgmr.msra.gmra.mrb[4].mxu0 %v6801_v28  ;;  %v5936_v28 = vld [vmem:[%s8404_s1 + $0x31c] ss:$48 sps:$4 sm:$0xff]  }
  0xca   :  { %4324 = vmatpush1.bf16.msra.mxu0 %v5976_v24  ;;  %v6098_v24 = vld [vmem:[%s8406_s3 + $0x184] ss:$12 sps:$4 sm:$0xff]  }
  0xcb   :  { %2097 = vmatpush1.bf16.msra.mxu1 %v5898_v8  ;;  %4325 = vmatprep.subr.bf16.mxu0 %v5984_v25  ;;  %v5985_v8 = vld [vmem:[%s8404_s1 + $0x678] ss:$48 sps:$4 sm:$0xff]  }
  0xcc   :  { %2098 = vmatprep.subr.bf16.mxu1 %v5906_v10  ;;  %v6048_v10 = vld [vmem:[%s8406_s3 + $0x120] ss:$12 sps:$4 sm:$0xff]   ;;  %v6009_v25 = vld [vmem:[%s8404_s1 + $0x7f8] ss:$48 sps:$4 sm:$0xff]  }
  0xce   :  { %4326 = vmatpush1.bf16.msra.mxu0 %v5982_v29  ;;  %v6023_v29 = vld [vmem:[%s8404_s1 + $0x8bc] ss:$48 sps:$4 sm:$0xff]  }
  0xcf   :  { %2099 = vmatpush1.bf16.msra.mxu1 %v5904_v13  ;;  %4327 = vmatprep.subr.bf16.mxu0 %v5990_v30  ;;  %v5999_v13 = vld [vmem:[%s8404_s1 + $0x73c] ss:$48 sps:$4 sm:$0xff]   ;;  %v6021_v30 = vld [vmem:[%s8404_s1 + $0x8b8] ss:$48 sps:$4 sm:$0xff]  }
  0xd0   :  { %2100 = vmatprep.subr.bf16.mxu1 %v5912_v14  ;;  %v6054_v14 = vld [vmem:[%s8406_s3 + $0x138] ss:$12 sps:$4 sm:$0xff]  }
  0xd2   :  { %4328 = vmatpush1.bf16.msra.mxu0 %v5988_v32  ;;  %v6035_v32 = vld [vmem:[%s8404_s1 + $0x8c] ss:$48 sps:$4 sm:$0xff]  }
  0xd3   :  { %2101 = vmatpush1.bf16.msra.mxu1 %v5910_v17  ;;  %4329 = vmatprep.subr.bf16.mxu0 %v5996_v33  ;;  %v6005_v17 = vld [vmem:[%s8404_s1 + $0x79c] ss:$48 sps:$4 sm:$0xff]   ;;  %v7393_v33 = vld [vmem:[%s8403_s0 + $0x8] ss:$12 sps:$4 sm:$0xff]  }
  0xd4   :  { %2102 = vmatprep.subr.bf16.mxu1 %v5918_v19  ;;  %v6060_v19 = vld [vmem:[%s8406_s3 + $0x150] ss:$12 sps:$4 sm:$0xff]  }
  0xd6   :  { %4330 = vmatpush1.bf16.msra.mxu0 %v5994_v36  ;;  %v6039_v36 = vld [vmem:[%s8404_s1 + $0xe8] ss:$48 sps:$4 sm:$0xff]  }
  0xd7   :  { %2103 = vmatpush1.bf16.msra.mxu1 %v5916_v22  ;;  %4331 = vmatprep.subr.bf16.mxu0 %v6002_v37  ;;  %v6011_v22 = vld [vmem:[%s8404_s1 + $0x7fc] ss:$48 sps:$4 sm:$0xff]   ;;  %v318_v37 = vlaneseq }
  0xd8   :  { %2104 = vmatprep.subr.bf16.mxu1 %v5924_v23  ;;  %v6066_v23 = vld [vmem:[%s8406_s3 + $0x168] ss:$12 sps:$4 sm:$0xff]  }
  0xda   :  { %4332 = vmatpush1.bf16.msra.mxu0 %v6000_v40  ;;  %v7412_v40 = vshrl.u32 %v318_v37, 7  ;;  %v6084_v37 = vld [vmem:[%s8404_s1 + $0x4a8] ss:$48 sps:$4 sm:$0xff]  }
  0xdb   :  { %2105 = vmatpush1.bf16.msra.mxu1 %v5922_v26  ;;  %4333 = vmatprep.subr.bf16.mxu0 %v6008_v41  ;;  %v6017_v26 = vld [vmem:[%s8404_s1 + $0x85c] ss:$48 sps:$4 sm:$0xff]   ;;  %v6051_v41 = vld [vmem:[%s8404_s1 + $0x1a8] ss:$48 sps:$4 sm:$0xff]  }
  0xdc   :  { %2106 = vmatprep.subr.bf16.mxu1 %v5930_v27  ;;  %v6015_v27 = vld [vmem:[%s8404_s1 + $0x858] ss:$48 sps:$4 sm:$0xff]  }
  0xde   :  { %4334 = vmatpush1.bf16.msra.mxu0 %v6006_v44  ;;  %v6059_v44 = vld [vmem:[%s8404_s1 + $0x20c] ss:$48 sps:$4 sm:$0xff]  }
  0xdf   :  { %2107 = vmatpush1.bf16.msra.mxu1 %v5928_v31  ;;  %4335 = vmatprep.subr.bf16.mxu0 %v6014_v45  ;;  %v6029_v31 = vld [vmem:[%s8404_s1 + $0x2c] ss:$48 sps:$4 sm:$0xff]   ;;  %v7432_v45 = vsub.s32 1, %v7412_v40 }
  0xe0   :  { %2108 = vmatprep.subr.bf16.mxu1 %v5936_v28  ;;  %v6027_v28 = vld [vmem:[%s8404_s1 + $0x28] ss:$48 sps:$4 sm:$0xff]  }
  0xe2   :  { %4336 = vmatpush1.bf16.msra.mxu0 %v6012_v48  ;;  %v6065_v48 = vld [vmem:[%s8404_s1 + $0x26c] ss:$48 sps:$4 sm:$0xff]  }
  0xe3   :  { %2109 = vmatpush1.bf16.msra.mxu1 %v5934_v34  ;;  %4337 = vmatprep.subr.bf16.mxu0 %v6020_v49  ;;  %v6033_v34 = vld [vmem:[%s8404_s1 + $0x88] ss:$48 sps:$4 sm:$0xff]  }
  0xe4   :  { %2110 = vmatprep.subr.bf16.mxu1 %v5942_v35  ;;  %v6041_v35 = vld [vmem:[%s8404_s1 + $0xec] ss:$48 sps:$4 sm:$0xff]  }
  0xe6   :  { %4338 = vmatpush1.bf16.msra.mxu0 %v6018_v52 }
  0xe7   :  { %2111 = vmatpush1.bf16.msra.mxu1 %v5940_v38  ;;  %4339 = vmatprep.subr.bf16.mxu0 %v6026_v53  ;;  %v6047_v38 = vld [vmem:[%s8404_s1 + $0x14c] ss:$48 sps:$4 sm:$0xff]   ;;  %v6063_v53 = vld [vmem:[%s8404_s1 + $0x268] ss:$48 sps:$4 sm:$0xff]  }
  0xe8   :  { %2112 = vmatprep.subr.bf16.mxu1 %v5948_v39  ;;  %v6045_v39 = vld [vmem:[%s8404_s1 + $0x148] ss:$48 sps:$4 sm:$0xff]  }
  0xea   :  { %4340 = vmatpush1.bf16.msra.mxu0 %v6024_v56 }
  0xeb   :  { %2113 = vmatpush1.bf16.msra.mxu1 %v5946_v42  ;;  %4341 = vmatprep.subr.bf16.mxu0 %v6032_v58  ;;  %v7423_v42 = vld [vmem:[%s8405_s2] sm:$0xff] }
  0xec   :  { %2114 = vmatprep.subr.bf16.mxu1 %v5954_v43  ;;  %v7426_v43 = vsub.s32 0, %v7412_v40  ;;  %v325_v49 = vrot.slane %v7423_v42, %v7432_v45 }
  0xee   :  { %4342 = vmatpush1.bf16.msra.mxu0 %v6030_v57  ;;  %v6069_v57 = vld [vmem:[%s8404_s1 + $0x2c8] ss:$48 sps:$4 sm:$0xff]  }
  0xef   :  { %2115 = vmatpush1.bf16.msra.mxu1 %v5952_v46  ;;  %4343 = vmatprep.subr.bf16.mxu0 %v6038_v18  ;;  %v6057_v46 = vld [vmem:[%s8404_s1 + $0x208] ss:$48 sps:$4 sm:$0xff]  }
  0xf0   :  { %2116 = vmatprep.subr.bf16.mxu1 %v5960_v47  ;;  %v321_v47 = vrot.slane %v7423_v42, %v7426_v43 }
  0xf2   :  { %4344 = vmatpush1.bf16.msra.mxu0 %v6036_v0  ;;  %v6074_v0 = vld [vmem:[%s8404_s1 + $0x32c] ss:$48 sps:$4 sm:$0xff]  }
  0xf3   :  { %2117 = vmatpush1.bf16.msra.mxu1 %v5958_v50  ;;  %4345 = vmatprep.subr.bf16.mxu0 %v6044_v2 }
  0xf4   :  { %2118 = vmatprep.subr.bf16.mxu1 %v5966_v51 }
  0xf6   :  { %4346 = vmatpush1.bf16.msra.mxu0 %v6042_v4  ;;  %v6072_v4 = vld [vmem:[%s8404_s1 + $0x328] ss:$48 sps:$4 sm:$0xff]  }
  0xf7   :  { %2119 = vmatpush1.bf16.msra.mxu1 %v5964_v54  ;;  %4347 = vmatprep.subr.bf16.mxu0 %v6050_v5  ;;  %v6071_v54 = vld [vmem:[%s8404_s1 + $0x2cc] ss:$48 sps:$4 sm:$0xff]  }
  0xf8   :  { %2120 = vmatprep.subr.bf16.mxu1 %v5972_v55  ;;  %v6096_v5 = vld [vmem:[%s8406_s3 + $0x180] ss:$12 sps:$4 sm:$0xff]  }
  0xfa   :  { %4348 = vmatpush1.bf16.msra.mxu0 %v6048_v10  ;;  %v6075_v10 = vld [vmem:[%s8404_s1 + $0x388] ss:$48 sps:$4 sm:$0xff]  }
  0xfb   :  { %2121 = vmatpush1.bf16.msra.mxu1 %v5970_v59  ;;  %4349 = vmatprep.subr.bf16.mxu0 %v6056_v11  ;;  %v6102_v11 = vld [vmem:[%s8406_s3 + $0x198] ss:$12 sps:$4 sm:$0xff]  }
  0xfc   :  { %2122 = vmatprep.subr.bf16.mxu1 %v5975_v60 }
  0xfe   :  { %4350 = vmatpush1.bf16.msra.mxu0 %v6054_v14  ;;  %v336_v14 = vsub.s32 4, %v7412_v40 }
  0xff   :  { %2123 = vmatpush1.bf16.msra.mxu1 %v5973_v61  ;;  %4351 = vmatprep.subr.bf16.mxu0 %v6062_v15  ;;  %v340_v15 = vsub.s32 5, %v7412_v40 }
 0x100   :  { %2135 = vmatprep.subr.bf16.mxu1 %v5981_v62 }
 0x102   :  { %2125 = vmatmul.mubr.bf16.vlgmr.msra.gmra.mrb[8].mxu1 %v7314_v7  ;;  %4352 = vmatpush1.bf16.msra.mxu0 %v6060_v19  ;;  %v6083_v19 = vld [vmem:[%s8404_s1 + $0x44c] ss:$48 sps:$4 sm:$0xff]  }
 0x103   :  { %2136 = vmatpush1.bf16.msra.mxu1 %v5979_v1  ;;  %2167 = vmatprep.mubr.bf16.mxu1 %v6484_v63 }
 0x104   :  { %2137 = vmatprep.subr.bf16.mxu1 %v5987_v3  ;;  %4353 = vmatprep.subr.bf16.mxu0 %v6068_v20  ;;  %v6116_v20 = vld [vmem:[%s8406_s3 + $0x1cc] ss:$12 sps:$4 sm:$0xff]  }
 0x106   :  { %4354 = vmatpush1.bf16.msra.mxu0 %v6066_v23  ;;  %v6081_v23 = vld [vmem:[%s8404_s1 + $0x448] ss:$48 sps:$4 sm:$0xff]  }
 0x107   :  { %2138 = vmatpush1.bf16.msra.mxu1 %v5985_v8  ;;  %4366 = vmatprep.subr.bf16.mxu0 %v6098_v24  ;;  %v6077_v8 = vld [vmem:[%s8404_s1 + $0x38c] ss:$48 sps:$4 sm:$0xff]   ;;  %v6114_v24 = vld [vmem:[%s8406_s3 + $0x1c8] ss:$12 sps:$4 sm:$0xff]  }
 0x108   :  { %2139 = vmatprep.subr.bf16.mxu1 %v5993_v9  ;;  %v6104_v9 = vld [vmem:[%s8406_s3 + $0x19c] ss:$12 sps:$4 sm:$0xff]  }
 0x10b   :  { %2140 = vmatpush1.bf16.msra.mxu1 %v5991_v12  ;;  %v6080_v12 = vld [vmem:[%s8404_s1 + $0x3ec] ss:$48 sps:$4 sm:$0xff]  }
 0x10c   :  { %2141 = vmatprep.subr.bf16.mxu1 %v5999_v13  ;;  %v6110_v13 = vld [vmem:[%s8406_s3 + $0x1b4] ss:$12 sps:$4 sm:$0xff]  }
 0x10f   :  { %2142 = vmatpush1.bf16.msra.mxu1 %v5997_v16  ;;  %v6078_v16 = vld [vmem:[%s8404_s1 + $0x3e8] ss:$48 sps:$4 sm:$0xff]  }
 0x110   :  { %2143 = vmatprep.subr.bf16.mxu1 %v6005_v17  ;;  %v6108_v17 = vld [vmem:[%s8406_s3 + $0x1b0] ss:$12 sps:$4 sm:$0xff]  }
 0x113   :  { %2144 = vmatpush1.bf16.msra.mxu1 %v6003_v21  ;;  %v337_v21 = vrot.slane %v7423_v42, %v336_v14  ;;  %v6165_v14 = vld [vmem:[%s8406_s3 + $0x2a4] ss:$12 sps:$4 sm:$0xff]  }
 0x114   :  { %2145 = vmatprep.subr.bf16.mxu1 %v6011_v22  ;;  %v341_v22 = vrot.slane %v7423_v42, %v340_v15  ;;  %v6123_v15 = vld [vmem:[%s8404_s1 + $0x7a8] ss:$48 sps:$4 sm:$0xff]  }
 0x117   :  { %2146 = vmatpush1.bf16.msra.mxu1 %v6009_v25  ;;  %v6086_v25 = vld [vmem:[%s8404_s1 + $0x4ac] ss:$48 sps:$4 sm:$0xff]  }
 0x118   :  { %2147 = vmatprep.subr.bf16.mxu1 %v6017_v26  ;;  %v6122_v26 = vld [vmem:[%s8406_s3 + $0x1e4] ss:$12 sps:$4 sm:$0xff]  }
 0x11b   :  { %2148 = vmatpush1.bf16.msra.mxu1 %v6015_v27 }
 0x11c   :  { %2149 = vmatprep.subr.bf16.mxu1 %v6023_v29 }
 0x11f   :  { %2150 = vmatpush1.bf16.msra.mxu1 %v6021_v30 }
 0x120   :  { %2264 = vmatprep.subr.bf16.mxu1 %v6029_v31 }
 0x122   :  { %2168 = vmatmul.mubr.bf16.vlgmr.msra.gmra.mrb[8].mxu1 %v7393_v33 }
 0x123   :  { %2265 = vmatpush1.bf16.msra.mxu1 %v6027_v28  ;;  %2296 = vmatprep.mubr.bf16.mxu1 %v7121_v6  ;;  %v6053_v6 = vld [vmem:[%s8404_s1 + $0x1ac] ss:$48 sps:$4 sm:$0xff]  }
 0x124   :  { %2266 = vmatprep.subr.bf16.mxu1 %v6035_v32  ;;  %v6120_v32 = vld [vmem:[%s8406_s3 + $0x1e0] ss:$12 sps:$4 sm:$0xff]  }
 0x127   :  { %2267 = vmatpush1.bf16.msra.mxu1 %v6033_v34 }
 0x128   :  { %2268 = vmatprep.subr.bf16.mxu1 %v6041_v35 }
 0x12b   :  { %2269 = vmatpush1.bf16.msra.mxu1 %v6039_v36 }
 0x12c   :  { %2270 = vmatprep.subr.bf16.mxu1 %v6047_v38 }
 0x12f   :  { %2271 = vmatpush1.bf16.msra.mxu1 %v6045_v39 }
 0x130   :  { %2272 = vmatprep.subr.bf16.mxu1 %v6053_v6  ;;  %v6128_v6 = vld [vmem:[%s8406_s3 + $0x1fc] ss:$12 sps:$4 sm:$0xff]  }
 0x133   :  { %2273 = vmatpush1.bf16.msra.mxu1 %v6051_v41  ;;  %v6089_v41 = vld [vmem:[%s8404_s1 + $0x50c] ss:$48 sps:$4 sm:$0xff]  }
 0x134   :  { %2274 = vmatprep.subr.bf16.mxu1 %v6059_v44 }
 0x135   :  { %v1911_v50 = vpop.f32.mrb[0].mxu1 }
 0x136   :  { %v5560_v51 = vadd.f32 %v1911_v50, %v321_v47  ;;  %v1913_v52 = vpop.f32.mrb[1].mxu1  ;;  %v6092_v50 = vld [vmem:[%s8404_s1 + $0x56c] ss:$48 sps:$4 sm:$0xff]  }
 0x137   :  { %v5561_v55 = vadd.f32 %v1913_v52, %v325_v49  ;;  %v1915_v56 = vpop.f32.mrb[2].mxu1  ;;  %2275 = vmatpush1.bf16.msra.mxu1 %v6057_v46  ;;  %v6134_v52 = vld [vmem:[%s8406_s3 + $0x214] ss:$12 sps:$4 sm:$0xff]  }
 0x138   :  { %v5562_v58 = vadd.f32 %v1915_v56, %v321_v47  ;;  %v1917_v59 = vpop.f32.mrb[3].mxu1  ;;  %2276 = vmatprep.subr.bf16.mxu1 %v6065_v48  ;;  %v2350_v18 = vmax.f32 %v5560_v51, 0.0  ;;  %v6087_v47 = vld [vmem:[%s8404_s1 + $0x508] ss:$48 sps:$4 sm:$0xff]  }
 0x139   :  { %v5563_v60 = vadd.f32 %v1917_v59, %v325_v49  ;;  %v2351_v61 = vmax.f32 %v5561_v55, 0.0  ;;  %v6126_v49 = vld [vmem:[%s8406_s3 + $0x1f8] ss:$12 sps:$4 sm:$0xff]   ;;  %v6095_v55 = vld [vmem:[%s8404_s1 + $0x5cc] ss:$48 sps:$4 sm:$0xff]  }
 0x13a   :  { %v2362_v62 = vmax.f32 %v5562_v58, 0.0  ;;  %v6140_v56 = vld [vmem:[%s8406_s3 + $0x22c] ss:$12 sps:$4 sm:$0xff]   ;;  %v6138_v59 = vld [vmem:[%s8406_s3 + $0x228] ss:$12 sps:$4 sm:$0xff]  }
 0x13b   :  { %v2363_v1 = vmax.f32 %v5563_v60, 0.0  ;;  %2277 = vmatpush1.bf16.msra.mxu1 %v6063_v53  ;;  %v6090_v53 = vld [vmem:[%s8404_s1 + $0x568] ss:$48 sps:$4 sm:$0xff]   ;;  %v6101_v60 = vld [vmem:[%s8404_s1 + $0x62c] ss:$48 sps:$4 sm:$0xff]  }
 0x13c   :  { %v7456_v2 = vpack.c.bf16 %v2362_v62, %v2350_v18  ;;  %2278 = vmatprep.subr.bf16.mxu1 %v6071_v54  ;;  %v2083_v27 = vpop.f32.mrb[0].mxu0  ;;  %v6132_v54 = vld [vmem:[%s8406_s3 + $0x210] ss:$12 sps:$4 sm:$0xff]   ;;  %v6093_v58 = vld [vmem:[%s8404_s1 + $0x5c8] ss:$48 sps:$4 sm:$0xff]  }
 0x13d   :  { %v7458_v3 = vpack.c.bf16 %v2363_v1, %v2351_v61  ;;  %v5568_v29 = vadd.f32 %v2083_v27, %v337_v21  ;;  %v2085_v30 = vpop.f32.mrb[1].mxu0  ;;  %v6144_v18 = vld [vmem:[%s8406_s3 + $0x240] ss:$12 sps:$4 sm:$0xff]   ;;  %v6099_v61 = vld [vmem:[%s8404_s1 + $0x628] ss:$48 sps:$4 sm:$0xff]  }
 0x13e   :  { %v5569_v31 = vadd.f32 %v2085_v30, %v341_v22  ;;  %v2087_v28 = vpop.f32.mrb[2].mxu0  ;;  %v6150_v62 = vld [vmem:[%s8406_s3 + $0x25c] ss:$12 sps:$4 sm:$0xff]   ;;  %v6148_v1 = vld [vmem:[%s8406_s3 + $0x258] ss:$12 sps:$4 sm:$0xff]  }
 0x13f   :  { %2279 = vmatpush1.bf16.msra.mxu1 %v6069_v57  ;;  %4355 = vmatprep.mubr.bf16.mxu0 %v7458_v3  ;;  %v2354_v34 = vmax.f32 %v5568_v29, 0.0  ;;  %v5570_v35 = vadd.f32 %v2087_v28, %v337_v21  ;;  %v2089_v36 = vpop.f32.mrb[3].mxu0  ;;  %v6146_v57 = vld [vmem:[%s8406_s3 + $0x244] ss:$12 sps:$4 sm:$0xff]   ;;  %v6143_v27 = vld [vmem:[%s8404_s1 + $0x8cc] ss:$48 sps:$4 sm:$0xff]  }
 0x140   :  { %4356 = vmatmul.mubr.bf16.vlgmr.msra.gmra.mrb[8].mxu0 %v7456_v2  ;;  %2280 = vmatprep.subr.bf16.mxu1 %v6074_v0  ;;  %v2355_v38 = vmax.f32 %v5569_v31, 0.0  ;;  %v5571_v39 = vadd.f32 %v2089_v36, %v341_v22  ;;  %v6107_v0 = vld [vmem:[%s8404_s1 + $0x68c] ss:$48 sps:$4 sm:$0xff]   ;;  %v6168_v21 = vld [vmem:[%s8406_s3 + $0x2b8] ss:$12 sps:$4 sm:$0xff]  }
 0x141   :  { %4367 = vmatpush1.bf16.msra.mxu0 %v6096_v5  ;;  %v2366_v44 = vmax.f32 %v5570_v35, 0.0  ;;  %v6113_v5 = vld [vmem:[%s8404_s1 + $0x6ec] ss:$48 sps:$4 sm:$0xff]   ;;  %v6178_v29 = vld [vmem:[%s8406_s3 + $0x2e8] ss:$12 sps:$4 sm:$0xff]  }
 0x142   :  { %4368 = vmatprep.subr.bf16.mxu0 %v6104_v9  ;;  %v2367_v46 = vmax.f32 %v5571_v39, 0.0  ;;  %v6153_v9 = vld [vmem:[%s8406_s3 + $0x270] ss:$12 sps:$4 sm:$0xff]   ;;  %v6141_v30 = vld [vmem:[%s8404_s1 + $0x8c8] ss:$48 sps:$4 sm:$0xff]  }
 0x143   :  { %2281 = vmatpush1.bf16.msra.mxu1 %v6072_v4  ;;  %v7529_v48 = vpack.c.bf16 %v2366_v44, %v2354_v34  ;;  %v6105_v4 = vld [vmem:[%s8404_s1 + $0x688] ss:$48 sps:$4 sm:$0xff]   ;;  %v6137_v22 = vld [vmem:[%s8404_s1 + $0x86c] ss:$48 sps:$4 sm:$0xff]   ;;  %v6185_v31 = vld [vmem:[%s8406_s3 + $0x304] ss:$12 sps:$4 sm:$0xff]  }
 0x144   :  { %2282 = vmatprep.subr.bf16.mxu1 %v6077_v8  ;;  %v7537_v51 = vpack.c.bf16 %v2367_v46, %v2355_v38  ;;  %v6155_v8 = vld [vmem:[%s8406_s3 + $0x274] ss:$12 sps:$4 sm:$0xff]  }
 0x145   :  { %4369 = vmatpush1.bf16.msra.mxu0 %v6102_v11  ;;  %v6160_v11 = vld [vmem:[%s8406_s3 + $0x28c] ss:$12 sps:$4 sm:$0xff]   ;;  %v6147_v28 = vld [vmem:[%s8406_s3 + $0xc8] ss:$12 sps:$4 sm:$0xff]  }
 0x146   :  { %4370 = vmatprep.subr.bf16.mxu0 %v6110_v13  ;;  %v6125_v13 = vld [vmem:[%s8404_s1 + $0x7ac] ss:$48 sps:$4 sm:$0xff]  }
 0x147   :  { %2283 = vmatpush1.bf16.msra.mxu1 %v6075_v10  ;;  %v6119_v10 = vld [vmem:[%s8404_s1 + $0x74c] ss:$48 sps:$4 sm:$0xff]  }
 0x148   :  { %2284 = vmatprep.subr.bf16.mxu1 %v6080_v12  ;;  %v6158_v12 = vld [vmem:[%s8406_s3 + $0x288] ss:$12 sps:$4 sm:$0xff]  }
 0x149   :  { %4371 = vmatpush1.bf16.msra.mxu0 %v6108_v17  ;;  %v6131_v17 = vld [vmem:[%s8404_s1 + $0x80c] ss:$48 sps:$4 sm:$0xff]  }
 0x14a   :  { %4372 = vmatprep.subr.bf16.mxu0 %v6116_v20  ;;  %v6129_v20 = vld [vmem:[%s8404_s1 + $0x808] ss:$48 sps:$4 sm:$0xff]  }
 0x14b   :  { %2285 = vmatpush1.bf16.msra.mxu1 %v6078_v16  ;;  %v6163_v16 = vld [vmem:[%s8406_s3 + $0x2a0] ss:$12 sps:$4 sm:$0xff]  }
 0x14c   :  { %2286 = vmatprep.subr.bf16.mxu1 %v6083_v19  ;;  %v6170_v19 = vld [vmem:[%s8406_s3 + $0x2bc] ss:$12 sps:$4 sm:$0xff]  }
 0x14d   :  { %4373 = vmatpush1.bf16.msra.mxu0 %v6114_v24  ;;  %v6173_v24 = vld [vmem:[%s8406_s3 + $0x2d0] ss:$12 sps:$4 sm:$0xff]  }
 0x14e   :  { %4374 = vmatprep.subr.bf16.mxu0 %v6122_v26  ;;  %v6180_v26 = vld [vmem:[%s8406_s3 + $0x2ec] ss:$12 sps:$4 sm:$0xff]  }
 0x14f   :  { %2287 = vmatpush1.bf16.msra.mxu1 %v6081_v23  ;;  %v6175_v23 = vld [vmem:[%s8406_s3 + $0x2d4] ss:$12 sps:$4 sm:$0xff]  }
 0x150   :  { %2288 = vmatprep.subr.bf16.mxu1 %v6086_v25  ;;  %v6135_v25 = vld [vmem:[%s8404_s1 + $0x868] ss:$48 sps:$4 sm:$0xff]  }
 0x151   :  { %4375 = vmatpush1.bf16.msra.mxu0 %v6120_v32  ;;  %v6151_v32 = vld [vmem:[%s8406_s3 + $0x8] ss:$12 sps:$4 sm:$0xff]  }
 0x152   :  { %4376 = vmatprep.subr.bf16.mxu0 %v6128_v6 }
 0x153   :  { %2289 = vmatpush1.bf16.msra.mxu1 %v6084_v37 }
 0x154   :  { %2290 = vmatprep.subr.bf16.mxu1 %v6089_v41 }
 0x155   :  { %4377 = vmatpush1.bf16.msra.mxu0 %v6126_v49 }
 0x156   :  { %4378 = vmatprep.subr.bf16.mxu0 %v6134_v52 }
 0x157   :  { %2291 = vmatpush1.bf16.msra.mxu1 %v6087_v47 }
 0x158   :  { %2292 = vmatprep.subr.bf16.mxu1 %v6092_v50 }
 0x159   :  { %4379 = vmatpush1.bf16.msra.mxu0 %v6132_v54 }
 0x15a   :  { %4380 = vmatprep.subr.bf16.mxu0 %v6140_v56 }
 0x15b   :  { %2293 = vmatpush1.bf16.msra.mxu1 %v6090_v53 }
 0x15c   :  { %2294 = vmatprep.subr.bf16.mxu1 %v6095_v55 }
 0x15d   :  { %4381 = vmatpush1.bf16.msra.mxu0 %v6138_v59 }
 0x15e   :  { %4382 = vmatprep.subr.bf16.mxu0 %v6146_v57 }
 0x15f   :  { %2295 = vmatpush1.bf16.msra.mxu1 %v6093_v58 }
 0x160   :  { %2307 = vmatprep.subr.bf16.mxu1 %v6101_v60 }
 0x161   :  { %4383 = vmatpush1.bf16.msra.mxu0 %v6144_v18 }
 0x162   :  { %2297 = vmatmul.mubr.bf16.vlgmr.msra.gmra.mrb[12].mxu1 %v7314_v7  ;;  %4384 = vmatprep.subr.bf16.mxu0 %v6150_v62  ;;  %v6111_v7 = vld [vmem:[%s8404_s1 + $0x6e8] ss:$48 sps:$4 sm:$0xff]  }
 0x163   :  { %2308 = vmatpush1.bf16.msra.mxu1 %v6099_v61  ;;  %2339 = vmatprep.mubr.bf16.mxu1 %v6484_v63  ;;  %v6117_v63 = vld [vmem:[%s8404_s1 + $0x748] ss:$48 sps:$4 sm:$0xff]  }
 0x164   :  { %2309 = vmatprep.subr.bf16.mxu1 %v6107_v0 }
 0x165   :  { %4385 = vmatpush1.bf16.msra.mxu0 %v6148_v1 }
 0x166   :  { %4386 = vmatprep.subr.bf16.mxu0 %v6155_v8 }
 0x167   :  { %2310 = vmatpush1.bf16.msra.mxu1 %v6105_v4 }
 0x168   :  { %2311 = vmatprep.subr.bf16.mxu1 %v6113_v5 }
 0x169   :  { %4387 = vmatpush1.bf16.msra.mxu0 %v6153_v9 }
 0x16a   :  { %4388 = vmatprep.subr.bf16.mxu0 %v6160_v11 }
 0x16b   :  { %2312 = vmatpush1.bf16.msra.mxu1 %v6111_v7 }
 0x16c   :  { %2313 = vmatprep.subr.bf16.mxu1 %v6119_v10 }
 0x16d   :  { %4389 = vmatpush1.bf16.msra.mxu0 %v6158_v12 }
 0x16e   :  { %4390 = vmatprep.subr.bf16.mxu0 %v6165_v14 }
 0x16f   :  { %2314 = vmatpush1.bf16.msra.mxu1 %v6117_v63 }
 0x170   :  { %2315 = vmatprep.subr.bf16.mxu1 %v6125_v13 }
 0x171   :  { %4391 = vmatpush1.bf16.msra.mxu0 %v6163_v16 }
 0x172   :  { %4392 = vmatprep.subr.bf16.mxu0 %v6170_v19 }
 0x173   :  { %2316 = vmatpush1.bf16.msra.mxu1 %v6123_v15 }
 0x174   :  { %2317 = vmatprep.subr.bf16.mxu1 %v6131_v17 }
 0x175   :  { %4393 = vmatpush1.bf16.msra.mxu0 %v6168_v21 }
 0x176   :  { %4394 = vmatprep.subr.bf16.mxu0 %v6175_v23 }
 0x177   :  { %2318 = vmatpush1.bf16.msra.mxu1 %v6129_v20 }
 0x178   :  { %2319 = vmatprep.subr.bf16.mxu1 %v6137_v22 }
 0x179   :  { %4395 = vmatpush1.bf16.msra.mxu0 %v6173_v24 }
 0x17a   :  { %4396 = vmatprep.subr.bf16.mxu0 %v6180_v26 }
 0x17b   :  { %2320 = vmatpush1.bf16.msra.mxu1 %v6135_v25 }
 0x17c   :  { %2321 = vmatprep.subr.bf16.mxu1 %v6143_v27 }
 0x17d   :  { %4397 = vmatpush1.bf16.msra.mxu0 %v6178_v29 }
 0x17e   :  { %4409 = vmatprep.subr.bf16.mxu0 %v6185_v31 }
 0x17f   :  { %2322 = vmatpush1.bf16.msra.mxu1 %v6141_v30 }
 0x180   :  { %10 = vsyncpa [#allocation3], 0  ;;  %5428 = vmatprep.subr.bf16.mxu1 %v6147_v28  ;;  %v6152_v34 = vld [vmem:[%s8406_s3 + $0xe0] ss:$12 sps:$4 sm:$0xff]   ;;  %v6157_v36 = vld [vmem:[%s8406_s3 + $0xf8] ss:$12 sps:$4 sm:$0xff]  }
 0x181   :  { %v6156_v35 = vld [vmem:[%s8406_s3 + $0x20] ss:$12 sps:$4 sm:$0xff]   ;;  %v6161_v37 = vld [vmem:[%s8406_s3 + $0x38] ss:$12 sps:$4 sm:$0xff]   ;;  %v6167_v38 = vld [vmem:[%s8406_s3 + $0x128] ss:$12 sps:$4 sm:$0xff]  }
 0x182   :  { %2340 = vmatmul.mubr.bf16.vlgmr.msra.gmra.mrb[12].mxu1 %v7393_v33  ;;  %v6162_v33 = vld [vmem:[%s8406_s3 + $0x110] ss:$12 sps:$4 sm:$0xff]   ;;  %v7691_v39 = vsub.s32 2, %v7412_v40  ;;  %v6171_v6 = vld [vmem:[%s8406_s3 + $0x68] ss:$12 sps:$4 sm:$0xff]   ;;  %v332_v41 = vsub.s32 3, %v7412_v40 }
 0x183   :  { %5429 = vmatpush3.bf16.msra.mxu1 %v6151_v32  ;;  %4613 = vmatprep.mubr.bf16.mxu1 %v7458_v3  ;;  %v6166_v3 = vld [vmem:[%s8406_s3 + $0x50] ss:$12 sps:$4 sm:$0xff]   ;;  %v6172_v44 = vld [vmem:[%s8406_s3 + $0x140] ss:$12 sps:$4 sm:$0xff]   ;;  %v6177_v50 = vld [vmem:[%s8406_s3 + $0x158] ss:$12 sps:$4 sm:$0xff]  }
 0x184   :  { %5430 = vmatprep.subr.bf16.mxu1 %v6152_v34  ;;  %v329_v46 = vrot.slane %v7423_v42, %v7691_v39  ;;  %v333_v47 = vrot.slane %v7423_v42, %v332_v41  ;;  %v6176_v49 = vld [vmem:[%s8406_s3 + $0x80] ss:$12 sps:$4 sm:$0xff]   ;;  %v6181_v58 = vld [vmem:[%s8406_s3 + $0x98] ss:$12 sps:$4 sm:$0xff]   ;;  %v6182_v60 = vld [vmem:[%s8406_s3 + $0x170] ss:$12 sps:$4 sm:$0xff]  }
 0x185   :  { %v6186_v1 = vld [vmem:[%s8406_s3 + $0xb0] ss:$12 sps:$4 sm:$0xff]   ;;  %v6187_v5 = vld [vmem:[%s8406_s3 + $0x248] ss:$12 sps:$4 sm:$0xff]   ;;  %v6183_v7 = vld [vmem:[%s8406_s3 + $0x300] ss:$12 sps:$4 sm:$0xff]  }
 0x186   :  { %v6190_v9 = vld [vmem:[%s8406_s3 + $0x31c] ss:$12 sps:$4 sm:$0xff]   ;;  %v6192_v11 = vld [vmem:[%s8406_s3 + $0x260] ss:$12 sps:$4 sm:$0xff]   ;;  %v6188_v63 = vld [vmem:[%s8406_s3 + $0x318] ss:$12 sps:$4 sm:$0xff]  }
 0x187   :  { %5431 = vmatpush3.bf16.msra.mxu1 %v6156_v35  ;;  %v6191_v10 = vld [vmem:[%s8406_s3 + $0x188] ss:$12 sps:$4 sm:$0xff]   ;;  %v6196_v13 = vld [vmem:[%s8406_s3 + $0x1a0] ss:$12 sps:$4 sm:$0xff]   ;;  %v6197_v14 = vld [vmem:[%s8406_s3 + $0x278] ss:$12 sps:$4 sm:$0xff]  }
 0x188   :  { %5432 = vmatprep.subr.bf16.mxu1 %v6157_v36  ;;  %v6195_v12 = vld [vmem:[%s8406_s3 + $0x334] ss:$12 sps:$4 sm:$0xff]   ;;  %v6193_v15 = vld [vmem:[%s8406_s3 + $0x330] ss:$12 sps:$4 sm:$0xff]   ;;  %v6200_v16 = vld [vmem:[%s8406_s3 + $0x34c] ss:$12 sps:$4 sm:$0xff]  }
 0x189   :  { %v6201_v17 = vld [vmem:[%s8406_s3 + $0x1b8] ss:$12 sps:$4 sm:$0xff]   ;;  %v6202_v20 = vld [vmem:[%s8406_s3 + $0x290] ss:$12 sps:$4 sm:$0xff]   ;;  %v6198_v22 = vld [vmem:[%s8406_s3 + $0x348] ss:$12 sps:$4 sm:$0xff]  }
 0x18a   :  { %v6205_v23 = vld [vmem:[%s8406_s3 + $0x364] ss:$12 sps:$4 sm:$0xff]   ;;  %v6207_v29 = vld [vmem:[%s8406_s3 + $0x2a8] ss:$12 sps:$4 sm:$0xff]   ;;  %v6203_v28 = vld [vmem:[%s8406_s3 + $0x360] ss:$12 sps:$4 sm:$0xff]  }
 0x18b   :  { %5433 = vmatpush3.bf16.msra.mxu1 %v6161_v37  ;;  %v6206_v25 = vld [vmem:[%s8406_s3 + $0x1d0] ss:$12 sps:$4 sm:$0xff]  }
 0x18c   :  { %5434 = vmatprep.subr.bf16.mxu1 %v6162_v33  ;;  %v6210_v36 = vld [vmem:[%s8406_s3 + $0x37c] ss:$12 sps:$4 sm:$0xff]  }
 0x18f   :  { %5435 = vmatpush3.bf16.msra.mxu1 %v6166_v3  ;;  %v6211_v3 = vld [vmem:[%s8406_s3 + $0x1e8] ss:$12 sps:$4 sm:$0xff]  }
 0x190   :  { %5436 = vmatprep.subr.bf16.mxu1 %v6167_v38 }
 0x193   :  { %5437 = vmatpush3.bf16.msra.mxu1 %v6171_v6  ;;  %v6212_v6 = vld [vmem:[%s8406_s3 + $0x2c0] ss:$12 sps:$4 sm:$0xff]  }
 0x194   :  { %5438 = vmatprep.subr.bf16.mxu1 %v6172_v44 }
 0x195   :  { %v1997_v52 = vpop.f32.mrb[4].mxu1 }
 0x196   :  { %v5564_v53 = vadd.f32 %v1997_v52, %v329_v46  ;;  %v1999_v54 = vpop.f32.mrb[5].mxu1  ;;  %v6216_v52 = vld [vmem:[%s8406_s3 + $0x200] ss:$12 sps:$4 sm:$0xff]  }
 0x197   :  { %v5565_v55 = vadd.f32 %v1999_v54, %v333_v47  ;;  %v2001_v56 = vpop.f32.mrb[6].mxu1  ;;  %5439 = vmatpush3.bf16.msra.mxu1 %v6176_v49  ;;  %v6215_v49 = vld [vmem:[%s8406_s3 + $0x394] ss:$12 sps:$4 sm:$0xff]   ;;  %v6213_v54 = vld [vmem:[%s8406_s3 + $0x390] ss:$12 sps:$4 sm:$0xff]  }
 0x198   :  { %v5566_v42 = vadd.f32 %v2001_v56, %v329_v46  ;;  %v2003_v59 = vpop.f32.mrb[7].mxu1  ;;  %5440 = vmatprep.subr.bf16.mxu1 %v6177_v50  ;;  %v2352_v18 = vmax.f32 %v5564_v53, 0.0  ;;  %v6208_v46 = vld [vmem:[%s8406_s3 + $0x378] ss:$12 sps:$4 sm:$0xff]  }
 0x199   :  { %v5567_v57 = vadd.f32 %v2003_v59, %v333_v47  ;;  %v2353_v62 = vmax.f32 %v5565_v55, 0.0  ;;  %v6217_v53 = vld [vmem:[%s8406_s3 + $0x2d8] ss:$12 sps:$4 sm:$0xff]  }
 0x19a   :  { %v2364_v61 = vmax.f32 %v5566_v42, 0.0  ;;  %v6220_v55 = vld [vmem:[%s8406_s3 + $0x3ac] ss:$12 sps:$4 sm:$0xff]   ;;  %v6218_v42 = vld [vmem:[%s8406_s3 + $0x3a8] ss:$12 sps:$4 sm:$0xff]  }
 0x19b   :  { %v2365_v0 = vmax.f32 %v5567_v57, 0.0  ;;  %5441 = vmatpush3.bf16.msra.mxu1 %v6181_v58  ;;  %v6221_v56 = vld [vmem:[%s8406_s3 + $0x218] ss:$12 sps:$4 sm:$0xff]   ;;  %v6222_v58 = vld [vmem:[%s8406_s3 + $0x2f0] ss:$12 sps:$4 sm:$0xff]  }
 0x19c   :  { %v7720_v4 = vpack.c.bf16 %v2364_v61, %v2352_v18  ;;  %5442 = vmatprep.subr.bf16.mxu1 %v6182_v60  ;;  %v2255_v24 = vpop.f32.mrb[4].mxu0  ;;  %v6225_v59 = vld [vmem:[%s8406_s3 + $0x3c4] ss:$12 sps:$4 sm:$0xff]   ;;  %v6227_v57 = vld [vmem:[%s8406_s3 + $0x3c8] ss:$12 sps:$4 sm:$0xff]  }
 0x19d   :  { %v2377_v8 = vpack.c.bf16 %v2365_v0, %v2353_v62  ;;  %v2257_v27 = vpop.f32.mrb[5].mxu0  ;;  %v6226_v60 = vld [vmem:[%s8406_s3 + $0x230] ss:$12 sps:$4 sm:$0xff]   ;;  %v6223_v18 = vld [vmem:[%s8406_s3 + $0x3c0] ss:$12 sps:$4 sm:$0xff]  }
 0x19e   :  { %v2259_v31 = vpop.f32.mrb[6].mxu0  ;;  %v6230_v61 = vld [vmem:[%s8406_s3 + $0x3dc] ss:$12 sps:$4 sm:$0xff]   ;;  %v6232_v0 = vld [vmem:[%s8406_s3 + $0x3e0] ss:$12 sps:$4 sm:$0xff]  }
 0x19f   :  { %4398 = vmatprep.mubr.bf16.mxu0 %v2377_v8  ;;  %5443 = vmatpush3.bf16.msra.mxu1 %v6186_v1  ;;  %v2261_v35 = vpop.f32.mrb[7].mxu0  ;;  %v6231_v62 = vld [vmem:[%s8406_s3 + $0x308] ss:$12 sps:$4 sm:$0xff]   ;;  %v6228_v1 = vld [vmem:[%s8406_s3 + $0x3d8] ss:$12 sps:$4 sm:$0xff]  }
 0x1a0   :  { %4399 = vmatmul.mubr.bf16.vlgmr.msra.gmra.mrb[8].mxu0 %v7720_v4  ;;  %5450 = vmatprep.subr.bf16.mxu1 %v6187_v5  ;;  %v6235_v5 = vld [vmem:[%s8406_s3 + $0x3f4] ss:$12 sps:$4 sm:$0xff]  }
 0x1a1   :  { %4410 = vmatpush1.bf16.msra.mxu0 %v6183_v7  ;;  %4441 = vmatprep.mubr.bf16.mxu0 %v7537_v51  ;;  %v6237_v7 = vld [vmem:[%s8406_s3 + $0x3f8] ss:$12 sps:$4 sm:$0xff]  }
 0x1a2   :  { %4614 = vmatmul.mubr.bf16.vlgmr.msra.gmra.mrb[16].mxu1 %v7456_v2  ;;  %4411 = vmatprep.subr.bf16.mxu0 %v6190_v9  ;;  %v7755_v2 = vld [vmem:[%s8405_s2 + $0x8] sm:$0xf]  ;;  %v6240_v9 = vld [vmem:[%s8406_s3 + $0x40c] ss:$12 sps:$4 sm:$0xff]  }
 0x1a3   :  { %5451 = vmatpush3.bf16.msra.mxu1 %v6191_v10  ;;  %4654 = vmatprep.mubr.bf16.mxu1 %v2377_v8  ;;  %v353_v19 = vrot.slane %v7755_v2, %v7426_v43  ;;  %v357_v21 = vrot.slane %v7755_v2, %v7432_v45  ;;  %v6236_v8 = vld [vmem:[%s8406_s3 + $0x320] ss:$12 sps:$4 sm:$0xff]   ;;  %v6242_v10 = vld [vmem:[%s8406_s3 + $0x410] ss:$12 sps:$4 sm:$0xff]  }
 0x1a4   :  { %5452 = vmatprep.subr.bf16.mxu1 %v6192_v11  ;;  %v6238_v11 = vld [vmem:[%s8406_s3 + $0x408] ss:$12 sps:$4 sm:$0xff]  }
 0x1a5   :  { %4412 = vmatpush1.bf16.msra.mxu0 %v6188_v63  ;;  %v5576_v26 = vadd.f32 %v2255_v24, %v353_v19  ;;  %v5577_v30 = vadd.f32 %v2257_v27, %v357_v21  ;;  %v5578_v34 = vadd.f32 %v2259_v31, %v353_v19  ;;  %v5579_v33 = vadd.f32 %v2261_v35, %v357_v21  ;;  %v6245_v63 = vld [vmem:[%s8406_s3 + $0x424] ss:$12 sps:$4 sm:$0xff]   ;;  %v6256_v21 = vld [vmem:[%s8406_s3 + $0x380] ss:$12 sps:$4 sm:$0xff]   ;;  %v6258_v27 = vld [vmem:[%s8406_s3 + $0x468] ss:$12 sps:$4 sm:$0xff]  }
 0x1a6   :  { %4413 = vmatprep.subr.bf16.mxu0 %v6195_v12  ;;  %v6246_v12 = vld [vmem:[%s8406_s3 + $0x350] ss:$12 sps:$4 sm:$0xff]   ;;  %v6248_v19 = vld [vmem:[%s8406_s3 + $0x438] ss:$12 sps:$4 sm:$0xff]   ;;  %v6267_v31 = vld [vmem:[%s8406_s3 + $0x548] ss:$12 sps:$4 sm:$0xff]  }
 0x1a7   :  { %5453 = vmatpush3.bf16.msra.mxu1 %v6196_v13  ;;  %v2358_v32 = vmax.f32 %v5576_v26, 0.0  ;;  %v2359_v37 = vmax.f32 %v5577_v30, 0.0  ;;  %v2370_v38 = vmax.f32 %v5578_v34, 0.0  ;;  %v2371_v44 = vmax.f32 %v5579_v33, 0.0  ;;  %v6247_v13 = vld [vmem:[%s8406_s3 + $0x428] ss:$12 sps:$4 sm:$0xff]  }
 0x1a8   :  { %5454 = vmatprep.subr.bf16.mxu1 %v6197_v14  ;;  %v6243_v14 = vld [vmem:[%s8406_s3 + $0x420] ss:$12 sps:$4 sm:$0xff]   ;;  %v6262_v26 = vld [vmem:[%s8406_s3 + $0x470] ss:$12 sps:$4 sm:$0xff]   ;;  %v6271_v34 = vld [vmem:[%s8406_s3 + $0x488] ss:$12 sps:$4 sm:$0xff]  }
 0x1a9   :  { %4414 = vmatpush1.bf16.msra.mxu0 %v6193_v15  ;;  %v7800_v47 = vpack.c.bf16 %v2370_v38, %v2358_v32  ;;  %v7805_v50 = vpack.c.bf16 %v2371_v44, %v2359_v37  ;;  %v6250_v15 = vld [vmem:[%s8406_s3 + $0x43c] ss:$12 sps:$4 sm:$0xff]   ;;  %v6260_v24 = vld [vmem:[%s8406_s3 + $0x46c] ss:$12 sps:$4 sm:$0xff]   ;;  %v6275_v37 = vld [vmem:[%s8406_s3 + $0x4b4] ss:$12 sps:$4 sm:$0xff]  }
 0x1aa   :  { %4415 = vmatprep.subr.bf16.mxu0 %v6200_v16  ;;  %v6251_v16 = vld [vmem:[%s8406_s3 + $0x368] ss:$12 sps:$4 sm:$0xff]   ;;  %v6266_v30 = vld [vmem:[%s8406_s3 + $0x3b0] ss:$12 sps:$4 sm:$0xff]   ;;  %v6272_v35 = vld [vmem:[%s8406_s3 + $0x560] ss:$12 sps:$4 sm:$0xff]  }
 0x1ab   :  { %5455 = vmatpush3.bf16.msra.mxu1 %v6201_v17  ;;  %v6252_v17 = vld [vmem:[%s8406_s3 + $0x440] ss:$12 sps:$4 sm:$0xff]   ;;  %v6270_v32 = vld [vmem:[%s8406_s3 + $0x49c] ss:$12 sps:$4 sm:$0xff]  }
 0x1ac   :  { %5456 = vmatprep.subr.bf16.mxu1 %v6202_v20  ;;  %v6255_v20 = vld [vmem:[%s8406_s3 + $0x454] ss:$12 sps:$4 sm:$0xff]   ;;  %v6280_v38 = vld [vmem:[%s8406_s3 + $0x4cc] ss:$12 sps:$4 sm:$0xff]   ;;  %v6282_v44 = vld [vmem:[%s8406_s3 + $0x590] ss:$12 sps:$4 sm:$0xff]  }
 0x1ad   :  { %4416 = vmatpush1.bf16.msra.mxu0 %v6198_v22  ;;  %v6257_v22 = vld [vmem:[%s8406_s3 + $0x458] ss:$12 sps:$4 sm:$0xff]   ;;  %v6276_v33 = vld [vmem:[%s8406_s3 + $0x4a0] ss:$12 sps:$4 sm:$0xff]  }
 0x1ae   :  { %4417 = vmatprep.subr.bf16.mxu0 %v6205_v23  ;;  %v6253_v23 = vld [vmem:[%s8406_s3 + $0x450] ss:$12 sps:$4 sm:$0xff]  }
 0x1af   :  { %5457 = vmatpush3.bf16.msra.mxu1 %v6206_v25  ;;  %v6261_v25 = vld [vmem:[%s8406_s3 + $0x398] ss:$12 sps:$4 sm:$0xff]  }
 0x1b0   :  { %5458 = vmatprep.subr.bf16.mxu1 %v6207_v29  ;;  %v6265_v29 = vld [vmem:[%s8406_s3 + $0x484] ss:$12 sps:$4 sm:$0xff]  }
 0x1b1   :  { %4418 = vmatpush1.bf16.msra.mxu0 %v6203_v28  ;;  %v6263_v28 = vld [vmem:[%s8406_s3 + $0x480] ss:$12 sps:$4 sm:$0xff]  }
 0x1b2   :  { %4419 = vmatprep.subr.bf16.mxu0 %v6210_v36  ;;  %v6268_v36 = vld [vmem:[%s8406_s3 + $0x498] ss:$12 sps:$4 sm:$0xff]  }
 0x1b3   :  { %5459 = vmatpush3.bf16.msra.mxu1 %v6211_v3  ;;  %v6277_v3 = vld [vmem:[%s8406_s3 + $0x578] ss:$12 sps:$4 sm:$0xff]  }
 0x1b4   :  { %5460 = vmatprep.subr.bf16.mxu1 %v6212_v6  ;;  %v6281_v6 = vld [vmem:[%s8406_s3 + $0x4b8] ss:$12 sps:$4 sm:$0xff]  }
 0x1b5   :  { %4420 = vmatpush1.bf16.msra.mxu0 %v6208_v46  ;;  %v6278_v46 = vld [vmem:[%s8406_s3 + $0x4c8] ss:$12 sps:$4 sm:$0xff]  }
 0x1b6   :  { %4421 = vmatprep.subr.bf16.mxu0 %v6215_v49  ;;  %v6285_v49 = vld [vmem:[%s8406_s3 + $0x4e4] ss:$12 sps:$4 sm:$0xff]  }
 0x1b7   :  { %5461 = vmatpush3.bf16.msra.mxu1 %v6216_v52  ;;  %v6286_v52 = vld [vmem:[%s8406_s3 + $0x4d0] ss:$12 sps:$4 sm:$0xff]  }
 0x1b8   :  { %5462 = vmatprep.subr.bf16.mxu1 %v6217_v53  ;;  %v6287_v53 = vld [vmem:[%s8406_s3 + $0x5a8] ss:$12 sps:$4 sm:$0xff]  }
 0x1b9   :  { %4422 = vmatpush1.bf16.msra.mxu0 %v6213_v54  ;;  %v6283_v54 = vld [vmem:[%s8406_s3 + $0x4e0] ss:$12 sps:$4 sm:$0xff]  }
 0x1ba   :  { %4423 = vmatprep.subr.bf16.mxu0 %v6220_v55  ;;  %v6290_v55 = vld [vmem:[%s8406_s3 + $0x4fc] ss:$12 sps:$4 sm:$0xff]  }
 0x1bb   :  { %5463 = vmatpush3.bf16.msra.mxu1 %v6221_v56  ;;  %v344_v56 = vsub.s32 6, %v7412_v40 }
 0x1bc   :  { %5464 = vmatprep.subr.bf16.mxu1 %v6222_v58  ;;  %v6291_v58 = vld [vmem:[%s8406_s3 + $0x4e8] ss:$12 sps:$4 sm:$0xff]  }
 0x1bd   :  { %4424 = vmatpush1.bf16.msra.mxu0 %v6218_v42  ;;  %v348_v42 = vsub.s32 7, %v7412_v40 }
 0x1be   :  { %4425 = vmatprep.subr.bf16.mxu0 %v6225_v59  ;;  %v6292_v59 = vld [vmem:[%s8406_s3 + $0x5c0] ss:$12 sps:$4 sm:$0xff]  }
 0x1bf   :  { %5465 = vmatpush3.bf16.msra.mxu1 %v6226_v60  ;;  %v6288_v60 = vld [vmem:[%s8406_s3 + $0x4f8] ss:$12 sps:$4 sm:$0xff]  }
 0x1c0   :  { %5472 = vmatprep.subr.bf16.mxu1 %v6227_v57  ;;  %v6459_v57 = vld [vmem:[%s8405_s2] sm:$0xff] }
 0x1c1   :  { %4426 = vmatpush1.bf16.msra.mxu0 %v6223_v18  ;;  %v345_v18 = vrot.slane %v6459_v57, %v344_v56  ;;  %v6337_v56 = vld [vmem:[%s8406_s3 + $0x758] ss:$12 sps:$4 sm:$0xff]  }
 0x1c2   :  { %4655 = vmatmul.mubr.bf16.vlgmr.msra.gmra.mrb[20].mxu1 %v7720_v4  ;;  %4427 = vmatprep.subr.bf16.mxu0 %v6230_v61  ;;  %v6233_v4 = vld [vmem:[%s8406_s3 + $0x3f0] ss:$12 sps:$4 sm:$0xff]   ;;  %v6295_v61 = vld [vmem:[%s8406_s3 + $0x514] ss:$12 sps:$4 sm:$0xff]  }
 0x1c3   :  { %5473 = vmatpush3.bf16.msra.mxu1 %v6231_v62  ;;  %4695 = vmatprep.mubr.bf16.mxu1 %v7537_v51  ;;  %v6241_v51 = vld [vmem:[%s8406_s3 + $0x338] ss:$12 sps:$4 sm:$0xff]   ;;  %v349_v62 = vrot.slane %v6459_v57, %v348_v42  ;;  %v6338_v57 = vld [vmem:[%s8406_s3 + $0x5e8] ss:$12 sps:$4 sm:$0xff]  }
 0x1c4   :  { %5474 = vmatprep.subr.bf16.mxu1 %v6232_v0  ;;  %v6296_v0 = vld [vmem:[%s8406_s3 + $0x500] ss:$12 sps:$4 sm:$0xff]  }
 0x1c5   :  { %4428 = vmatpush1.bf16.msra.mxu0 %v6228_v1  ;;  %v6297_v1 = vld [vmem:[%s8406_s3 + $0x5d8] ss:$12 sps:$4 sm:$0xff]  }
 0x1c6   :  { %4429 = vmatprep.subr.bf16.mxu0 %v6235_v5  ;;  %v6340_v42 = vld [vmem:[%s8406_s3 + $0x5ec] ss:$12 sps:$4 sm:$0xff]  }
 0x1c7   :  { %5475 = vmatpush3.bf16.msra.mxu1 %v6236_v8  ;;  %v6293_v8 = vld [vmem:[%s8406_s3 + $0x510] ss:$12 sps:$4 sm:$0xff]  }
 0x1c8   :  { %5476 = vmatprep.subr.bf16.mxu1 %v6237_v7 }
 0x1c9   :  { %4430 = vmatpush1.bf16.msra.mxu0 %v6233_v4 }
 0x1ca   :  { %4431 = vmatprep.subr.bf16.mxu0 %v6240_v9  ;;  %v6300_v9 = vld [vmem:[%s8406_s3 + $0x52c] ss:$12 sps:$4 sm:$0xff]  }
 0x1cb   :  { %5477 = vmatpush3.bf16.msra.mxu1 %v6241_v51 }
 0x1cc   :  { %5478 = vmatprep.subr.bf16.mxu1 %v6242_v10 }
 0x1cd   :  { %4432 = vmatpush1.bf16.msra.mxu0 %v6238_v11  ;;  %v6301_v11 = vld [vmem:[%s8406_s3 + $0x518] ss:$12 sps:$4 sm:$0xff]  }
 0x1ce   :  { %4433 = vmatprep.subr.bf16.mxu0 %v6245_v63 }
 0x1cf   :  { %5479 = vmatpush3.bf16.msra.mxu1 %v6246_v12 }
 0x1d0   :  { %5480 = vmatprep.subr.bf16.mxu1 %v6247_v13 }
 0x1d1   :  { %4434 = vmatpush1.bf16.msra.mxu0 %v6243_v14  ;;  %v6302_v14 = vld [vmem:[%s8406_s3 + $0x5f0] ss:$12 sps:$4 sm:$0xff]  }
 0x1d2   :  { %4435 = vmatprep.subr.bf16.mxu0 %v6250_v15 }
 0x1d3   :  { %5481 = vmatpush3.bf16.msra.mxu1 %v6251_v16  ;;  %v6298_v16 = vld [vmem:[%s8406_s3 + $0x528] ss:$12 sps:$4 sm:$0xff]  }
 0x1d4   :  { %5482 = vmatprep.subr.bf16.mxu1 %v6252_v17 }
 0x1d5   :  { %4436 = vmatpush1.bf16.msra.mxu0 %v6248_v19  ;;  %v6305_v19 = vld [vmem:[%s8406_s3 + $0x544] ss:$12 sps:$4 sm:$0xff]  }
 0x1d6   :  { %4437 = vmatprep.subr.bf16.mxu0 %v6255_v20 }
 0x1d7   :  { %5483 = vmatpush3.bf16.msra.mxu1 %v6256_v21 }
 0x1d8   :  { %5484 = vmatprep.subr.bf16.mxu1 %v6257_v22  ;;  %v6306_v22 = vld [vmem:[%s8406_s3 + $0x530] ss:$12 sps:$4 sm:$0xff]  }
 0x1d9   :  { %4438 = vmatpush1.bf16.msra.mxu0 %v6253_v23 }
 0x1da   :  { %4439 = vmatprep.subr.bf16.mxu0 %v6260_v24  ;;  %v6307_v24 = vld [vmem:[%s8406_s3 + $0x6c8] ss:$12 sps:$4 sm:$0xff]  }
 0x1db   :  { %5485 = vmatpush3.bf16.msra.mxu1 %v6261_v25 }
 0x1dc   :  { %5486 = vmatprep.subr.bf16.mxu1 %v6262_v26  ;;  %v6303_v26 = vld [vmem:[%s8406_s3 + $0x540] ss:$12 sps:$4 sm:$0xff]  }
 0x1dd   :  { %4440 = vmatpush1.bf16.msra.mxu0 %v6258_v27  ;;  %v6310_v27 = vld [vmem:[%s8406_s3 + $0x55c] ss:$12 sps:$4 sm:$0xff]  }
 0x1de   :  { %4452 = vmatprep.subr.bf16.mxu0 %v6265_v29  ;;  %v6311_v29 = vld [vmem:[%s8406_s3 + $0x608] ss:$12 sps:$4 sm:$0xff]  }
 0x1df   :  { %5487 = vmatpush3.bf16.msra.mxu1 %v6266_v30  ;;  %v6312_v30 = vld [vmem:[%s8406_s3 + $0x6e0] ss:$12 sps:$4 sm:$0xff]  }
 0x1e0   :  { %4442 = vmatmul.mubr.bf16.vlgmr.msra.gmra.mrb[8].mxu0 %v7529_v48  ;;  %5494 = vmatprep.subr.bf16.mxu1 %v6267_v31  ;;  %v6308_v31 = vld [vmem:[%s8406_s3 + $0x558] ss:$12 sps:$4 sm:$0xff]  }
 0x1e1   :  { %4453 = vmatpush1.bf16.msra.mxu0 %v6263_v28  ;;  %v6315_v28 = vld [vmem:[%s8406_s3 + $0x574] ss:$12 sps:$4 sm:$0xff]  }
 0x1e2   :  { %4696 = vmatmul.mubr.bf16.vlgmr.msra.gmra.mrb[24].mxu1 %v7529_v48  ;;  %4454 = vmatprep.subr.bf16.mxu0 %v6270_v32  ;;  %v6273_v48 = vld [vmem:[%s8406_s3 + $0x4b0] ss:$12 sps:$4 sm:$0xff]   ;;  %v6316_v32 = vld [vmem:[%s8406_s3 + $0x620] ss:$12 sps:$4 sm:$0xff]  }
 0x1e3   :  { %5495 = vmatpush3.bf16.msra.mxu1 %v6271_v34  ;;  %v6317_v34 = vld [vmem:[%s8406_s3 + $0x6f8] ss:$12 sps:$4 sm:$0xff]  }
 0x1e4   :  { %5496 = vmatprep.subr.bf16.mxu1 %v6272_v35  ;;  %v6313_v35 = vld [vmem:[%s8406_s3 + $0x570] ss:$12 sps:$4 sm:$0xff]  }
 0x1e5   :  { %4455 = vmatpush1.bf16.msra.mxu0 %v6268_v36  ;;  %v6320_v36 = vld [vmem:[%s8406_s3 + $0x58c] ss:$12 sps:$4 sm:$0xff]  }
 0x1e6   :  { %4456 = vmatprep.subr.bf16.mxu0 %v6275_v37  ;;  %v6321_v37 = vld [vmem:[%s8406_s3 + $0x638] ss:$12 sps:$4 sm:$0xff]  }
 0x1e7   :  { %5497 = vmatpush3.bf16.msra.mxu1 %v6276_v33  ;;  %v6322_v33 = vld [vmem:[%s8406_s3 + $0x710] ss:$12 sps:$4 sm:$0xff]  }
 0x1e8   :  { %5498 = vmatprep.subr.bf16.mxu1 %v6277_v3  ;;  %v6318_v3 = vld [vmem:[%s8406_s3 + $0x588] ss:$12 sps:$4 sm:$0xff]  }
 0x1e9   :  { %4457 = vmatpush1.bf16.msra.mxu0 %v6273_v48  ;;  %v6325_v48 = vld [vmem:[%s8406_s3 + $0x5a4] ss:$12 sps:$4 sm:$0xff]  }
 0x1ea   :  { %4458 = vmatprep.subr.bf16.mxu0 %v6280_v38  ;;  %v6326_v38 = vld [vmem:[%s8406_s3 + $0x650] ss:$12 sps:$4 sm:$0xff]  }
 0x1eb   :  { %5499 = vmatpush3.bf16.msra.mxu1 %v6281_v6  ;;  %v6327_v6 = vld [vmem:[%s8406_s3 + $0x728] ss:$12 sps:$4 sm:$0xff]  }
 0x1ec   :  { %5500 = vmatprep.subr.bf16.mxu1 %v6282_v44  ;;  %v6323_v44 = vld [vmem:[%s8406_s3 + $0x5a0] ss:$12 sps:$4 sm:$0xff]  }
 0x1ed   :  { %4459 = vmatpush1.bf16.msra.mxu0 %v6278_v46  ;;  %v6330_v46 = vld [vmem:[%s8406_s3 + $0x5bc] ss:$12 sps:$4 sm:$0xff]  }
 0x1ee   :  { %4460 = vmatprep.subr.bf16.mxu0 %v6285_v49  ;;  %v6331_v49 = vld [vmem:[%s8406_s3 + $0x668] ss:$12 sps:$4 sm:$0xff]  }
 0x1ef   :  { %5501 = vmatpush3.bf16.msra.mxu1 %v6286_v52  ;;  %v6332_v52 = vld [vmem:[%s8406_s3 + $0x740] ss:$12 sps:$4 sm:$0xff]  }
 0x1f0   :  { %5502 = vmatprep.subr.bf16.mxu1 %v6287_v53  ;;  %v6328_v53 = vld [vmem:[%s8406_s3 + $0x5b8] ss:$12 sps:$4 sm:$0xff]  }
 0x1f1   :  { %4461 = vmatpush1.bf16.msra.mxu0 %v6283_v54  ;;  %v6335_v54 = vld [vmem:[%s8406_s3 + $0x5d4] ss:$12 sps:$4 sm:$0xff]  }
 0x1f2   :  { %4462 = vmatprep.subr.bf16.mxu0 %v6290_v55  ;;  %v6336_v55 = vld [vmem:[%s8406_s3 + $0x680] ss:$12 sps:$4 sm:$0xff]  }
 0x1f3   :  { %5503 = vmatpush3.bf16.msra.mxu1 %v6291_v58  ;;  %v6333_v58 = vld [vmem:[%s8406_s3 + $0x5d0] ss:$12 sps:$4 sm:$0xff]  }
 0x1f4   :  { %5504 = vmatprep.subr.bf16.mxu1 %v6292_v59  ;;  %v6341_v59 = vld [vmem:[%s8406_s3 + $0x698] ss:$12 sps:$4 sm:$0xff]  }
 0x1f5   :  { %4463 = vmatpush1.bf16.msra.mxu0 %v6288_v60  ;;  %v2169_v5 = vpop.f32.mrb[8].mxu1  ;;  %v6342_v60 = vld [vmem:[%s8406_s3 + $0x770] ss:$12 sps:$4 sm:$0xff]  }
 0x1f6   :  { %v5572_v7 = vadd.f32 %v2169_v5, %v345_v18  ;;  %v2171_v4 = vpop.f32.mrb[9].mxu1  ;;  %4464 = vmatprep.subr.bf16.mxu0 %v6295_v61  ;;  %v6346_v61 = vld [vmem:[%s8406_s3 + $0x6b0] ss:$12 sps:$4 sm:$0xff]   ;;  %v6372_v5 = vld [vmem:[%s8406_s3 + $0x788] ss:$12 sps:$4 sm:$0xff]  }
 0x1f7   :  { %v5573_v51 = vadd.f32 %v2171_v4, %v349_v62  ;;  %v2173_v10 = vpop.f32.mrb[10].mxu1  ;;  %5505 = vmatpush3.bf16.msra.mxu1 %v6296_v0  ;;  %v6343_v0 = vld [vmem:[%s8406_s3 + $0x600] ss:$12 sps:$4 sm:$0xff]  }
 0x1f8   :  { %v2356_v63 = vmax.f32 %v5572_v7, 0.0  ;;  %v5574_v12 = vadd.f32 %v2173_v10, %v345_v18  ;;  %v2175_v13 = vpop.f32.mrb[11].mxu1  ;;  %5506 = vmatprep.subr.bf16.mxu1 %v6297_v1  ;;  %v6345_v18 = vld [vmem:[%s8406_s3 + $0x604] ss:$12 sps:$4 sm:$0xff]   ;;  %v6349_v1 = vld [vmem:[%s8406_s3 + $0x61c] ss:$12 sps:$4 sm:$0xff]  }
 0x1f9   :  { %v5575_v15 = vadd.f32 %v2175_v13, %v349_v62  ;;  %4465 = vmatpush1.bf16.msra.mxu0 %v6293_v8  ;;  %v2357_v20 = vmax.f32 %v5573_v51, 0.0  ;;  %v6371_v62 = vld [vmem:[%s8406_s3 + $0x848] ss:$12 sps:$4 sm:$0xff]   ;;  %v6376_v8 = vld [vmem:[%s8406_s3 + $0x860] ss:$12 sps:$4 sm:$0xff]  }
 0x1fa   :  { %v2368_v17 = vmax.f32 %v5574_v12, 0.0  ;;  %4466 = vmatprep.subr.bf16.mxu0 %v6300_v9  ;;  %v6347_v7 = vld [vmem:[%s8406_s3 + $0x618] ss:$12 sps:$4 sm:$0xff]   ;;  %v6352_v4 = vld [vmem:[%s8406_s3 + $0x634] ss:$12 sps:$4 sm:$0xff]  }
 0x1fb   :  { %v2369_v21 = vmax.f32 %v5575_v15, 0.0  ;;  %5507 = vmatpush3.bf16.msra.mxu1 %v6301_v11  ;;  %v6377_v9 = vld [vmem:[%s8406_s3 + $0x7a0] ss:$12 sps:$4 sm:$0xff]   ;;  %v6350_v51 = vld [vmem:[%s8406_s3 + $0x630] ss:$12 sps:$4 sm:$0xff]  }
 0x1fc   :  { %v8035_v23 = vpack.c.bf16 %v2368_v17, %v2356_v63  ;;  %5508 = vmatprep.subr.bf16.mxu1 %v6302_v14  ;;  %v6355_v10 = vld [vmem:[%s8406_s3 + $0x64c] ss:$12 sps:$4 sm:$0xff]   ;;  %v6386_v63 = vld [vmem:[%s8406_s3 + $0x890] ss:$12 sps:$4 sm:$0xff]   ;;  %v6353_v12 = vld [vmem:[%s8406_s3 + $0x648] ss:$12 sps:$4 sm:$0xff]  }
 0x1fd   :  { %v2381_v25 = vpack.c.bf16 %v2369_v21, %v2357_v20  ;;  %4467 = vmatpush1.bf16.msra.mxu0 %v6298_v16  ;;  %v6382_v11 = vld [vmem:[%s8406_s3 + $0x7b8] ss:$12 sps:$4 sm:$0xff]   ;;  %v6387_v14 = vld [vmem:[%s8406_s3 + $0x7d0] ss:$12 sps:$4 sm:$0xff]   ;;  %v6391_v15 = vld [vmem:[%s8406_s3 + $0x8a8] ss:$12 sps:$4 sm:$0xff]  }
 0x1fe   :  { %4468 = vmatprep.subr.bf16.mxu0 %v6305_v19  ;;  %v6358_v13 = vld [vmem:[%s8406_s3 + $0x664] ss:$12 sps:$4 sm:$0xff]   ;;  %v6356_v16 = vld [vmem:[%s8406_s3 + $0x660] ss:$12 sps:$4 sm:$0xff]   ;;  %v6361_v17 = vld [vmem:[%s8406_s3 + $0x67c] ss:$12 sps:$4 sm:$0xff]  }
 0x1ff   :  { %4484 = vmatprep.mubr.bf16.mxu0 %v2381_v25  ;;  %5509 = vmatpush3.bf16.msra.mxu1 %v6306_v22  ;;  %v6392_v19 = vld [vmem:[%s8406_s3 + $0x7e8] ss:$12 sps:$4 sm:$0xff]   ;;  %v6396_v20 = vld [vmem:[%s8406_s3 + $0x8c0] ss:$12 sps:$4 sm:$0xff]   ;;  %v6359_v21 = vld [vmem:[%s8406_s3 + $0x678] ss:$12 sps:$4 sm:$0xff]  }
 0x200   :  { %4736 = vmatprep.mubr.bf16.mxu1 %v2381_v25  ;;  %5516 = vmatprep.subr.bf16.mxu1 %v6307_v24  ;;  %v6364_v22 = vld [vmem:[%s8406_s3 + $0x694] ss:$12 sps:$4 sm:$0xff]   ;;  %v6401_v24 = vld [vmem:[%s8406_s3 + $0x8d8] ss:$12 sps:$4 sm:$0xff]   ;;  %v6362_v25 = vld [vmem:[%s8406_s3 + $0x690] ss:$12 sps:$4 sm:$0xff]  }
 0x201   :  { %4469 = vmatpush1.bf16.msra.mxu0 %v6303_v26  ;;  %v6367_v26 = vld [vmem:[%s8406_s3 + $0x6ac] ss:$12 sps:$4 sm:$0xff]  }
 0x202   :  { %4737 = vmatmul.mubr.bf16.vlgmr.msra.gmra.mrb[28].mxu1 %v8035_v23  ;;  %4470 = vmatprep.subr.bf16.mxu0 %v6310_v27  ;;  %v6402_v27 = vld [vmem:[%s8406_s3 + $0x818] ss:$12 sps:$4 sm:$0xff]  }
 0x203   :  { %5517 = vmatpush3.bf16.msra.mxu1 %v6311_v29  ;;  %4777 = vmatprep.mubr.bf16.mxu1 %v7805_v50  ;;  %v6406_v29 = vld [vmem:[%s8406_s3 + $0x8f0] ss:$12 sps:$4 sm:$0xff]  }
 0x204   :  { %5518 = vmatprep.subr.bf16.mxu1 %v6312_v30  ;;  %v6365_v30 = vld [vmem:[%s8406_s3 + $0x6a8] ss:$12 sps:$4 sm:$0xff]  }
 0x205   :  { %4471 = vmatpush1.bf16.msra.mxu0 %v6308_v31  ;;  %v6370_v31 = vld [vmem:[%s8406_s3 + $0x6c4] ss:$12 sps:$4 sm:$0xff]  }
 0x206   :  { %4472 = vmatprep.subr.bf16.mxu0 %v6315_v28  ;;  %v6407_v28 = vld [vmem:[%s8406_s3 + $0x830] ss:$12 sps:$4 sm:$0xff]  }
 0x207   :  { %5519 = vmatpush3.bf16.msra.mxu1 %v6316_v32  ;;  %v6368_v32 = vld [vmem:[%s8406_s3 + $0x6c0] ss:$12 sps:$4 sm:$0xff]  }
 0x208   :  { %5520 = vmatprep.subr.bf16.mxu1 %v6317_v34  ;;  %v6375_v34 = vld [vmem:[%s8406_s3 + $0x6dc] ss:$12 sps:$4 sm:$0xff]  }
 0x209   :  { %4473 = vmatpush1.bf16.msra.mxu0 %v6313_v35  ;;  %v6373_v35 = vld [vmem:[%s8406_s3 + $0x6d8] ss:$12 sps:$4 sm:$0xff]  }
 0x20a   :  { %4474 = vmatprep.subr.bf16.mxu0 %v6320_v36  ;;  %v6380_v36 = vld [vmem:[%s8406_s3 + $0x6f4] ss:$12 sps:$4 sm:$0xff]  }
 0x20b   :  { %5521 = vmatpush3.bf16.msra.mxu1 %v6321_v37  ;;  %v6378_v37 = vld [vmem:[%s8406_s3 + $0x6f0] ss:$12 sps:$4 sm:$0xff]  }
 0x20c   :  { %5522 = vmatprep.subr.bf16.mxu1 %v6322_v33  ;;  %v6385_v33 = vld [vmem:[%s8406_s3 + $0x70c] ss:$12 sps:$4 sm:$0xff]  }
 0x20d   :  { %4475 = vmatpush1.bf16.msra.mxu0 %v6318_v3  ;;  %v6383_v3 = vld [vmem:[%s8406_s3 + $0x708] ss:$12 sps:$4 sm:$0xff]  }
 0x20e   :  { %4476 = vmatprep.subr.bf16.mxu0 %v6325_v48  ;;  %v6390_v48 = vld [vmem:[%s8406_s3 + $0x724] ss:$12 sps:$4 sm:$0xff]  }
 0x20f   :  { %5523 = vmatpush3.bf16.msra.mxu1 %v6326_v38  ;;  %v6388_v38 = vld [vmem:[%s8406_s3 + $0x720] ss:$12 sps:$4 sm:$0xff]  }
 0x210   :  { %5524 = vmatprep.subr.bf16.mxu1 %v6327_v6  ;;  %v6395_v6 = vld [vmem:[%s8406_s3 + $0x73c] ss:$12 sps:$4 sm:$0xff]  }
 0x211   :  { %4477 = vmatpush1.bf16.msra.mxu0 %v6323_v44  ;;  %v6393_v44 = vld [vmem:[%s8406_s3 + $0x738] ss:$12 sps:$4 sm:$0xff]  }
 0x212   :  { %4478 = vmatprep.subr.bf16.mxu0 %v6330_v46  ;;  %v361_v46 = vrot.slane %v7755_v2, %v7691_v39 }
 0x213   :  { %5525 = vmatpush3.bf16.msra.mxu1 %v6331_v49  ;;  %v6400_v49 = vld [vmem:[%s8406_s3 + $0x754] ss:$12 sps:$4 sm:$0xff]  }
 0x214   :  { %5526 = vmatprep.subr.bf16.mxu1 %v6332_v52  ;;  %v365_v52 = vrot.slane %v7755_v2, %v332_v41  ;;  %v6403_v2 = vld [vmem:[%s8406_s3 + $0x768] ss:$12 sps:$4 sm:$0xff]  }
 0x215   :  { %4479 = vmatpush1.bf16.msra.mxu0 %v6328_v53 }
 0x216   :  { %4480 = vmatprep.subr.bf16.mxu0 %v6335_v54  ;;  %v6398_v54 = vld [vmem:[%s8406_s3 + $0x750] ss:$12 sps:$4 sm:$0xff]  }
 0x217   :  { %5527 = vmatpush3.bf16.msra.mxu1 %v6336_v55 }
 0x218   :  { %5528 = vmatprep.subr.bf16.mxu1 %v6337_v56 }
 0x219   :  { %4481 = vmatpush1.bf16.msra.mxu0 %v6333_v58  ;;  %v6405_v58 = vld [vmem:[%s8406_s3 + $0x76c] ss:$12 sps:$4 sm:$0xff]  }
 0x21a   :  { %4482 = vmatprep.subr.bf16.mxu0 %v6340_v42 }
 0x21b   :  { %5529 = vmatpush3.bf16.msra.mxu1 %v6341_v59 }
 0x21c   :  { %5530 = vmatprep.subr.bf16.mxu1 %v6342_v60 }
 0x21d   :  { %4483 = vmatpush1.bf16.msra.mxu0 %v6338_v57 }
 0x21e   :  { %4495 = vmatprep.subr.bf16.mxu0 %v6345_v18 }
 0x21f   :  { %5531 = vmatpush3.bf16.msra.mxu1 %v6346_v61 }
 0x220   :  { %4485 = vmatmul.mubr.bf16.vlgmr.msra.gmra.mrb[8].mxu0 %v8035_v23  ;;  %5538 = vmatprep.subr.bf16.mxu1 %v6371_v62  ;;  %v6397_v23 = vld [vmem:[%s8406_s3 + $0x800] ss:$12 sps:$4 sm:$0xff]   ;;  %v6410_v62 = vld [vmem:[%s8406_s3 + $0x784] ss:$12 sps:$4 sm:$0xff]  }
 0x221   :  { %4496 = vmatpush1.bf16.msra.mxu0 %v6343_v0  ;;  %4527 = vmatprep.mubr.bf16.mxu0 %v7805_v50  ;;  %v6381_v50 = vld [vmem:[%s8406_s3 + $0x878] ss:$12 sps:$4 sm:$0xff]  }
 0x222   :  { %4778 = vmatmul.mubr.bf16.vlgmr.msra.gmra.mrb[32].mxu1 %v7800_v47  ;;  %4497 = vmatprep.subr.bf16.mxu0 %v6349_v1 }
 0x223   :  { %5539 = vmatpush3.bf16.msra.mxu1 %v6372_v5 }
 0x224   :  { %5540 = vmatprep.subr.bf16.mxu1 %v6376_v8  ;;  %v6408_v8 = vld [vmem:[%s8406_s3 + $0x780] ss:$12 sps:$4 sm:$0xff]  }
 0x225   :  { %4498 = vmatpush1.bf16.msra.mxu0 %v6347_v7  ;;  %v6413_v7 = vld [vmem:[%s8406_s3 + $0x79c] ss:$12 sps:$4 sm:$0xff]  }
 0x226   :  { %4499 = vmatprep.subr.bf16.mxu0 %v6352_v4  ;;  %v6411_v4 = vld [vmem:[%s8406_s3 + $0x798] ss:$12 sps:$4 sm:$0xff]  }
 0x227   :  { %5541 = vmatpush3.bf16.msra.mxu1 %v6377_v9  ;;  %v6416_v9 = vld [vmem:[%s8406_s3 + $0x7b4] ss:$12 sps:$4 sm:$0xff]  }
 0x228   :  { %5542 = vmatprep.subr.bf16.mxu1 %v6381_v50  ;;  %v6414_v50 = vld [vmem:[%s8406_s3 + $0x7b0] ss:$12 sps:$4 sm:$0xff]  }
 0x229   :  { %4500 = vmatpush1.bf16.msra.mxu0 %v6350_v51  ;;  %v6417_v51 = vld [vmem:[%s8406_s3 + $0x7c8] ss:$12 sps:$4 sm:$0xff]  }
 0x22a   :  { %4501 = vmatprep.subr.bf16.mxu0 %v6355_v10  ;;  %v6422_v10 = vld [vmem:[%s8406_s3 + $0x7e4] ss:$12 sps:$4 sm:$0xff]  }
 0x22b   :  { %5543 = vmatpush3.bf16.msra.mxu1 %v6382_v11  ;;  %v6420_v11 = vld [vmem:[%s8406_s3 + $0x7e0] ss:$12 sps:$4 sm:$0xff]  }
 0x22c   :  { %5544 = vmatprep.subr.bf16.mxu1 %v6386_v63  ;;  %v6425_v63 = vld [vmem:[%s8406_s3 + $0x7fc] ss:$12 sps:$4 sm:$0xff]  }
 0x22d   :  { %4502 = vmatpush1.bf16.msra.mxu0 %v6353_v12  ;;  %v6423_v12 = vld [vmem:[%s8406_s3 + $0x7f8] ss:$12 sps:$4 sm:$0xff]  }
 0x22e   :  { %4503 = vmatprep.subr.bf16.mxu0 %v6358_v13  ;;  %v6428_v13 = vld [vmem:[%s8406_s3 + $0x814] ss:$12 sps:$4 sm:$0xff]  }
 0x22f   :  { %5545 = vmatpush3.bf16.msra.mxu1 %v6387_v14 }
 0x230   :  { %5546 = vmatprep.subr.bf16.mxu1 %v6391_v15  ;;  %v6426_v15 = vld [vmem:[%s8406_s3 + $0x810] ss:$12 sps:$4 sm:$0xff]  }
 0x231   :  { %4504 = vmatpush1.bf16.msra.mxu0 %v6356_v16 }
 0x232   :  { %4505 = vmatprep.subr.bf16.mxu0 %v6361_v17  ;;  %v6431_v17 = vld [vmem:[%s8406_s3 + $0x82c] ss:$12 sps:$4 sm:$0xff]  }
 0x233   :  { %5547 = vmatpush3.bf16.msra.mxu1 %v6392_v19 }
 0x234   :  { %5548 = vmatprep.subr.bf16.mxu1 %v6396_v20 }
 0x235   :  { %4506 = vmatpush1.bf16.msra.mxu0 %v6359_v21 }
 0x236   :  { %4507 = vmatprep.subr.bf16.mxu0 %v6364_v22 }
 0x237   :  { %5549 = vmatpush3.bf16.msra.mxu1 %v6397_v23  ;;  %v6429_v23 = vld [vmem:[%s8406_s3 + $0x828] ss:$12 sps:$4 sm:$0xff]  }
 0x238   :  { %5550 = vmatprep.subr.bf16.mxu1 %v6401_v24  ;;  %v6434_v24 = vld [vmem:[%s8406_s3 + $0x844] ss:$12 sps:$4 sm:$0xff]  }
 0x239   :  { %4508 = vmatpush1.bf16.msra.mxu0 %v6362_v25  ;;  %v6432_v25 = vld [vmem:[%s8406_s3 + $0x840] ss:$12 sps:$4 sm:$0xff]  }
 0x23a   :  { %4509 = vmatprep.subr.bf16.mxu0 %v6367_v26  ;;  %v6437_v26 = vld [vmem:[%s8406_s3 + $0x85c] ss:$12 sps:$4 sm:$0xff]  }
 0x23b   :  { %5551 = vmatpush3.bf16.msra.mxu1 %v6402_v27  ;;  %v6435_v27 = vld [vmem:[%s8406_s3 + $0x858] ss:$12 sps:$4 sm:$0xff]  }
 0x23c   :  { %5552 = vmatprep.subr.bf16.mxu1 %v6406_v29  ;;  %v6440_v29 = vld [vmem:[%s8406_s3 + $0x874] ss:$12 sps:$4 sm:$0xff]  }
 0x23d   :  { %4510 = vmatpush1.bf16.msra.mxu0 %v6365_v30  ;;  %v6438_v30 = vld [vmem:[%s8406_s3 + $0x870] ss:$12 sps:$4 sm:$0xff]  }
 0x23e   :  { %4511 = vmatprep.subr.bf16.mxu0 %v6370_v31  ;;  %v6443_v31 = vld [vmem:[%s8406_s3 + $0x88c] ss:$12 sps:$4 sm:$0xff]  }
 0x23f   :  { %5553 = vmatpush3.bf16.msra.mxu1 %v6407_v28  ;;  %v6441_v28 = vld [vmem:[%s8406_s3 + $0x888] ss:$12 sps:$4 sm:$0xff]  }
 0x241   :  { %4512 = vmatpush1.bf16.msra.mxu0 %v6368_v32  ;;  %v6446_v32 = vld [vmem:[%s8406_s3 + $0x8a4] ss:$12 sps:$4 sm:$0xff]  }
 0x242   :  { %4513 = vmatprep.subr.bf16.mxu0 %v6375_v34  ;;  %v6444_v34 = vld [vmem:[%s8406_s3 + $0x8a0] ss:$12 sps:$4 sm:$0xff]  }
 0x245   :  { %4514 = vmatpush1.bf16.msra.mxu0 %v6373_v35  ;;  %v6449_v35 = vld [vmem:[%s8406_s3 + $0x8bc] ss:$12 sps:$4 sm:$0xff]  }
 0x246   :  { %4515 = vmatprep.subr.bf16.mxu0 %v6380_v36  ;;  %v2770_v36 = vld [vmem:[%s8407_s4] sm:$0x7] }
 0x249   :  { %4516 = vmatpush1.bf16.msra.mxu0 %v6378_v37  ;;  %v6447_v37 = vld [vmem:[%s8406_s3 + $0x8b8] ss:$12 sps:$4 sm:$0xff]  }
 0x24a   :  { %4517 = vmatprep.subr.bf16.mxu0 %v6385_v33  ;;  %v6452_v33 = vld [vmem:[%s8406_s3 + $0x8d4] ss:$12 sps:$4 sm:$0xff]  }
 0x24d   :  { %4518 = vmatpush1.bf16.msra.mxu0 %v6383_v3  ;;  %v2783_v3 = vrot.slane %v2770_v36, %v7691_v39 }
 0x24e   :  { %4519 = vmatprep.subr.bf16.mxu0 %v6390_v48 }
 0x251   :  { %4520 = vmatpush1.bf16.msra.mxu0 %v6388_v38  ;;  %v6450_v38 = vld [vmem:[%s8406_s3 + $0x8d0] ss:$12 sps:$4 sm:$0xff]  }
 0x252   :  { %4521 = vmatprep.subr.bf16.mxu0 %v6395_v6 }
 0x255   :  { %4522 = vmatpush1.bf16.msra.mxu0 %v6393_v44  ;;  %v2341_v53 = vpop.f32.mrb[12].mxu1  ;;  %v6455_v44 = vld [vmem:[%s8406_s3 + $0x8ec] ss:$12 sps:$4 sm:$0xff]  }
 0x256   :  { %v5580_v55 = vadd.f32 %v2341_v53, %v361_v46  ;;  %v2343_v56 = vpop.f32.mrb[13].mxu1  ;;  %4523 = vmatprep.subr.bf16.mxu0 %v6400_v49 }
 0x257   :  { %v5581_v42 = vadd.f32 %v2343_v56, %v365_v52  ;;  %v2345_v59 = vpop.f32.mrb[14].mxu1  ;;  %v6453_v56 = vld [vmem:[%s8406_s3 + $0x8e8] ss:$12 sps:$4 sm:$0xff]  }
 0x258   :  { %v2360_v60 = vmax.f32 %v5580_v55, 0.0  ;;  %v5582_v57 = vadd.f32 %v2345_v59, %v361_v46  ;;  %v2347_v40 = vpop.f32.mrb[15].mxu1 }
 0x259   :  { %v2361_v18 = vmax.f32 %v5581_v42, 0.0  ;;  %v5583_v41 = vadd.f32 %v2347_v40, %v365_v52  ;;  %4524 = vmatpush1.bf16.msra.mxu0 %v6398_v54 }
 0x25a   :  { %v2372_v61 = vmax.f32 %v5582_v57, 0.0  ;;  %4525 = vmatprep.subr.bf16.mxu0 %v6405_v58 }
 0x25b   :  { %v2373_v0 = vmax.f32 %v5583_v41, 0.0 }
 0x25c   :  { %v8287_v1 = vpack.c.bf16 %v2372_v61, %v2360_v60 }
 0x25d   :  { %v2385_v5 = vpack.c.bf16 %v2373_v0, %v2361_v18  ;;  %4526 = vmatpush1.bf16.msra.mxu0 %v6403_v2 }
 0x25e   :  { %4538 = vmatprep.subr.bf16.mxu0 %v6410_v62 }
 0x25f   :  { %4818 = vmatprep.mubr.bf16.mxu1 %v2385_v5 }
 0x260   :  { %4528 = vmatmul.mubr.bf16.vlgmr.msra.gmra.mrb[8].mxu0 %v7800_v47  ;;  %4819 = vmatmul.mubr.bf16.vlgmr.msra.gmra.mrb[36].mxu1 %v8287_v1  ;;  %v6419_v47 = vld [vmem:[%s8406_s3 + $0x7cc] ss:$12 sps:$4 sm:$0xff]   ;;  %s6485_s3 = smov [#allocation2]  }
 0x261   :  { %4539 = vmatpush1.bf16.msra.mxu0 %v6408_v8  ;;  %4570 = vmatprep.mubr.bf16.mxu0 %v2385_v5  ;;  %s4838_s15 = sshll.u32 %s6485_s3, 4  ;;  %s4839_s15 = int_to_ptr.vmem [resolvable:$true] %s4838_s15 }
 0x262   :  { %4540 = vmatprep.subr.bf16.mxu0 %v6413_v7  ;;  %s6460_s16 = scalar_lea.vmem %s4839_s15, 768  ;;  %p6465_p1 = scmp.lt.s32.totalorder %s4839_s15, %s4839_s15 }
 0x263   :  { %p6461_p0 = scmp.ne.s32.totalorder %s4839_s15, %s6460_s16  ;;  %p6466_p2 = scmp.lt.s32.totalorder %s6460_s16, %s6460_s16 }
 0x265   :  { %4541 = vmatpush1.bf16.msra.mxu0 %v6411_v4  ;;  %p6467_p3 = por %p6466_p2, %p6465_p1 }
 0x266   :  { %4542 = vmatprep.subr.bf16.mxu0 %v6416_v9 }
 0x267   :  { %p6468_p4 = pnand %p6467_p3, %p6461_p0 }
 0x269   :  { %4543 = vmatpush1.bf16.msra.mxu0 %v6414_v50 }
 0x26a   :  { %4544 = vmatprep.subr.bf16.mxu0 %v6419_v47 }
 0x26d   :  { %4545 = vmatpush1.bf16.msra.mxu0 %v6417_v51 }
 0x26e   :  { %4546 = vmatprep.subr.bf16.mxu0 %v6422_v10 }
 0x271   :  { %4547 = vmatpush1.bf16.msra.mxu0 %v6420_v11 }
 0x272   :  { %4548 = vmatprep.subr.bf16.mxu0 %v6425_v63 }
 0x275   :  { %4549 = vmatpush1.bf16.msra.mxu0 %v6423_v12  ;;  %v5444_v14 = vpop.f32.mrb[16].mxu1 }
 0x276   :  { %v5445_v16 = vpop.f32.mrb[17].mxu1  ;;  %4550 = vmatprep.subr.bf16.mxu0 %v6428_v13 }
 0x277   :  { %v5446_v19 = vadd.f32 %v5445_v16, %v5444_v14  ;;  %v5447_v20 = vpop.f32.mrb[18].mxu1 }
 0x278   :  { %v5448_v21 = vpop.f32.mrb[19].mxu1 }
 0x279   :  { %4551 = vmatpush1.bf16.msra.mxu0 %v6426_v15  ;;  %v5449_v22 = vadd.f32 %v5448_v21, %v5447_v20  ;;  %v4616_v46 = vadd.f32 %v5446_v19, %v2783_v3 }
 0x27a   :  { %4552 = vmatprep.subr.bf16.mxu0 %v6431_v17 }
 0x27b   :  { %v4619_v54 = vadd.f32 %v5449_v22, %v2783_v3  ;;  %v2775_v22 = vrot.slane %v2770_v36, %v7426_v43 }
 0x27d   :  { %4553 = vmatpush1.bf16.msra.mxu0 %v6429_v23  ;;  %v2779_v23 = vrot.slane %v2770_v36, %v7432_v45 }
 0x27e   :  { %4554 = vmatprep.subr.bf16.mxu0 %v6434_v24 }
 0x281   :  { %4555 = vmatpush1.bf16.msra.mxu0 %v6432_v25 }
 0x282   :  { %4556 = vmatprep.subr.bf16.mxu0 %v6437_v26 }
 0x285   :  { %4557 = vmatpush1.bf16.msra.mxu0 %v6435_v27 }
 0x286   :  { %4558 = vmatprep.subr.bf16.mxu0 %v6440_v29 }
 0x289   :  { %4559 = vmatpush1.bf16.msra.mxu0 %v6438_v30 }
 0x28a   :  { %4560 = vmatprep.subr.bf16.mxu0 %v6443_v31 }
 0x28d   :  { %4561 = vmatpush1.bf16.msra.mxu0 %v6441_v28 }
 0x28e   :  { %4562 = vmatprep.subr.bf16.mxu0 %v6446_v32 }
 0x291   :  { %4563 = vmatpush1.bf16.msra.mxu0 %v6444_v34 }
 0x292   :  { %4564 = vmatprep.subr.bf16.mxu0 %v6449_v35 }
 0x295   :  { %4565 = vmatpush1.bf16.msra.mxu0 %v6447_v37  ;;  %v5466_v48 = vpop.f32.mrb[20].mxu1 }
 0x296   :  { %v5467_v6 = vpop.f32.mrb[21].mxu1  ;;  %4566 = vmatprep.subr.bf16.mxu0 %v6452_v33 }
 0x297   :  { %v5468_v49 = vadd.f32 %v5467_v6, %v5466_v48  ;;  %v5469_v52 = vpop.f32.mrb[22].mxu1 }
 0x298   :  { %v5470_v53 = vpop.f32.mrb[23].mxu1 }
 0x299   :  { %v4657_v55 = vadd.f32 %v5468_v49, %v4616_v46  ;;  %4567 = vmatpush1.bf16.msra.mxu0 %v6450_v38  ;;  %v5471_v39 = vadd.f32 %v5470_v53, %v5469_v52 }
 0x29a   :  { %4568 = vmatprep.subr.bf16.mxu0 %v6455_v44 }
 0x29b   :  { %v4660_v58 = vadd.f32 %v5471_v39, %v4619_v54 }
 0x29d   :  { %4569 = vmatpush1.bf16.msra.mxu0 %v6453_v56 }
 0x2a0   :  { %4571 = vmatmul.mubr.bf16.vlgmr.msra.gmra.mrb[8].mxu0 %v8287_v1 }
 0x2b5   :  { %v5488_v42 = vpop.f32.mrb[24].mxu1 }
 0x2b6   :  { %v5489_v59 = vpop.f32.mrb[25].mxu1 }
 0x2b7   :  { %v5490_v60 = vadd.f32 %v5489_v59, %v5488_v42  ;;  %v5491_v57 = vpop.f32.mrb[26].mxu1 }
 0x2b8   :  { %v5492_v40 = vpop.f32.mrb[27].mxu1 }
 0x2b9   :  { %v4698_v18 = vadd.f32 %v5490_v60, %v4657_v55  ;;  %v5493_v41 = vadd.f32 %v5492_v40, %v5491_v57 }
 0x2bb   :  { %v4701_v2 = vadd.f32 %v5493_v41, %v4660_v58 }
 0x2d5   :  { %v5510_v61 = vpop.f32.mrb[28].mxu1 }
 0x2d6   :  { %v5511_v62 = vpop.f32.mrb[29].mxu1 }
 0x2d7   :  { %v5512_v0 = vadd.f32 %v5511_v62, %v5510_v61  ;;  %v5513_v5 = vpop.f32.mrb[30].mxu1 }
 0x2d8   :  { %v5514_v8 = vpop.f32.mrb[31].mxu1 }
 0x2d9   :  { %v4739_v7 = vadd.f32 %v5512_v0, %v4698_v18  ;;  %v5515_v4 = vadd.f32 %v5514_v8, %v5513_v5 }
 0x2db   :  { %v4742_v9 = vadd.f32 %v5515_v4, %v4701_v2 }
 0x2f5   :  { %v5532_v50 = vpop.f32.mrb[32].mxu1 }
 0x2f6   :  { %v5533_v47 = vpop.f32.mrb[33].mxu1 }
 0x2f7   :  { %v5534_v51 = vadd.f32 %v5533_v47, %v5532_v50  ;;  %v5535_v1 = vpop.f32.mrb[34].mxu1 }
 0x2f8   :  { %v5536_v10 = vpop.f32.mrb[35].mxu1 }
 0x2f9   :  { %v4780_v11 = vadd.f32 %v5534_v51, %v4739_v7  ;;  %v5537_v63 = vadd.f32 %v5536_v10, %v5535_v1 }
 0x2fb   :  { %v4783_v12 = vadd.f32 %v5537_v63, %v4742_v9 }
 0x333   :  { %v5554_v13 = vpop.f32.mrb[36].mxu1 }
 0x334   :  { %v5555_v14 = vpop.f32.mrb[37].mxu1 }
 0x335   :  { %v5556_v15 = vadd.f32 %v5555_v14, %v5554_v13  ;;  %v5557_v16 = vpop.f32.mrb[38].mxu1 }
 0x336   :  { %v5558_v17 = vpop.f32.mrb[39].mxu1 }
 0x337   :  { %v4821_v19 = vadd.f32 %v5556_v15, %v4780_v11  ;;  %v5559_v20 = vadd.f32 %v5558_v17, %v5557_v16 }
 0x339   :  { %4829 = vst [vmem:[#allocation2 + $0x10] sm:$0xff] %v4821_v19  ;;  %v4824_v21 = vadd.f32 %v5559_v20, %v4783_v12 }
 0x33b   :  { %4832 = vst [vmem:[#allocation2 + $0x28] sm:$0xff] %v4824_v21 }
 0x373   :  { %v4572_v24 = vpop.f32.mrb[8].mxu0 }
 0x374   :  { %v5584_v25 = vadd.f32 %v4572_v24, %v2775_v22  ;;  %v4574_v26 = vpop.f32.mrb[9].mxu0 }
 0x375   :  { %v5585_v27 = vadd.f32 %v4574_v26, %v2779_v23  ;;  %v4576_v29 = vpop.f32.mrb[10].mxu0 }
 0x376   :  { %4827 = vst [vmem:[#allocation2] sm:$0xff] %v5584_v25  ;;  %v5586_v30 = vadd.f32 %v4576_v29, %v2775_v22  ;;  %v4578_v31 = vpop.f32.mrb[11].mxu0 }
 0x377   :  { %4828 = vst [vmem:[#allocation2 + $0x8] sm:$0xff] %v5585_v27  ;;  %v5587_v28 = vadd.f32 %v4578_v31, %v2779_v23 }
 0x378   :  { %4830 = vst [vmem:[#allocation2 + $0x18] sm:$0xff] %v5586_v30 }
 0x379   :  { %4831 = vst [vmem:[#allocation2 + $0x20] sm:$0xff] %v5587_v28 }
 0x37a   :  { %6471 = shalt.err (!%p6468_p4)
}
 0x37b   :  { %s6472_s19 = scalar_lea.hbm %s8408_s5, 768 }
 0x37c   :  { %p6473_p5 = scmp.ne.s32.totalorder %s8408_s5, %s6472_s19  ;;  %p6476_p6 = scmp.lt.u32.totalorder %s6472_s19, %s8408_s5 }
 0x37e   :  { %p6478_p7 = pnand %p6476_p6, %p6473_p5 }
 0x380   :  { %6481 = shalt.err (!%p6478_p7)
}
 0x381   :  { %s6486_s24 = smov 384   ;;  %s6487_s25 = smov 24  }
 0x382   :  { %4844 = dma.vmem_to_hbm [thread:$0]  %s4839_s15, 768, %s8408_s5, [#allocation3], %s6486_s24, %s6486_s24, %s6487_s25  }
 0x383   :  { %6482 = dma.done.wait [#allocation3], 768  }
 0x384   :  { %6483 = vsyncadd [#allocation3], 4294966528 }
 0x385   :  { %4848 = vsyncpa [#allocation3], 1 }

</bundles_post_ra>
